<compile_context>
chip_gen: v5e
topology: v5e:2x2
jax: 0.10.0
libtpu: 0.0.40
codegen_flags: <defaults>
</compile_context>

<pallas_src>
import numpy as np
import jax
import jax.numpy as jnp
from jax.experimental import pallas as pl
from jax.experimental.pallas import tpu as pltpu


# ------------------------------- helpers ------------------------------------

def _round_up(x, m):
    return (x + m - 1) // m * m


def _pool_matrix_np(h, w, oh, ow):
    """Adaptive-average-pool weights (PyTorch adaptive_avg_pool2d binning).
    Equals F.interpolate(mode='area') when h, w divide evenly by oh, ow."""
    def axis_mat(size, osize):
        m = np.zeros((osize, size), dtype=np.float32)
        for i in range(osize):
            s = (i * size) // osize
            e = -((-(i + 1) * size) // osize)   # ceil((i+1)*size/osize)
            m[i, s:e] = 1.0 / (e - s)
        return m
    mh = axis_mat(h, oh)                         # (oh, h)
    mw = axis_mat(w, ow)                         # (ow, w)
    return np.einsum('ab,cd->acbd', mh, mw).reshape(oh * ow, h * w)


def _full_spec(a):
    nd = a.ndim
    return pl.BlockSpec(a.shape, lambda i: (0,) * nd)


def _num_batch_tiles(n):
    """2 balanced 'parallel' grid steps on multi-TensorCore chips (v7x/v4/v5p),
    a single grid step on 1-TC chips (v5e/v6e) where extra steps are overhead."""
    try:
        kind = jax.devices()[0].device_kind.lower()
    except Exception:
        kind = ""
    multi_tc = ("v7" in kind) or ("v4" in kind) or ("v5p" in kind)
    if multi_tc and n >= 2 and n % 2 == 0:
        return 2
    return 1


# ---------------------------- fused Pallas kernels ---------------------------

def _make_mlsp_kernel(n_stages, b_tile, wide, compute_dtype):
    """Fused backbone + MLSP pooling for one batch tile per grid step.

    refs layout:
      x_ref                      # (b_tile, S0, cin_pad), compute_dtype
      (w_s, b_s) * n_stages      # w_s: (K_pad, 128) lane-folded, b_s: (1,128) f32
      p_down_s * (n_stages - 1)  # (S_{s+1}, S_s), compute_dtype
      [p5_s * n_stages]          # (25, S_s), compute_dtype (only if wide)
      o_ref                      # (b_tile, out_rows, 128) f32, lane-dense
    """
    def kernel(*refs):
        idx = 0
        x_ref = refs[idx]; idx += 1
        wb = refs[idx: idx + 2 * n_stages]; idx += 2 * n_stages
        pdown = refs[idx: idx + n_stages - 1]; idx += n_stages - 1
        p5 = ()
        if wide:
            p5 = refs[idx: idx + n_stages]; idx += n_stages
        o_ref = refs[idx]

        for b in range(b_tile):                      # static unroll over tile
            x = x_ref[b]                             # (S0, cin_pad)
            out = jnp.zeros(o_ref.shape[1:], jnp.float32)
            for s in range(n_stages):
                w = wb[2 * s][...]
                bias = wb[2 * s + 1][...]
                # 1x1 conv as MXU matmul (N=128 lane-dense), f32 accumulation,
                # f32 epilogue.  Lanes outside this stage's range stay exact 0.
                h = jnp.dot(x, w, preferred_element_type=jnp.float32)
                h = jnp.maximum(h + bias, 0.0)       # (S_s, 128) f32
                if wide:
                    h_cd = h.astype(compute_dtype)   # single cast, reused
                    # area pool to 5x5; lanes line up -> plain accumulate.
                    out = out + jnp.dot(p5[s][...], h_cd,
                                        preferred_element_type=jnp.float32)
                    if s != n_stages - 1:
                        x = jnp.dot(pdown[s][...], h_cd,
                                    preferred_element_type=jnp.float32
                                    ).astype(compute_dtype)
                else:
                    # global average pool: VPU/XLU reduction, no MXU.
                    out = out + jnp.mean(h, axis=0, keepdims=True)
                    if s != n_stages - 1:
                        x = jnp.dot(pdown[s][...], h.astype(compute_dtype),
                                    preferred_element_type=jnp.float32
                                    ).astype(compute_dtype)
            o_ref[b] = out
    return kernel


def _make_backbone_kernel(n_stages, b_tile, compute_dtype):
    """Fused backbone only; writes every stage's feature map (forward-hook),
    lane-dense (S_s, 128) slabs (channels sliced outside)."""
    def kernel(*refs):
        idx = 0
        x_ref = refs[idx]; idx += 1
        wb = refs[idx: idx + 2 * n_stages]; idx += 2 * n_stages
        pdown = refs[idx: idx + n_stages - 1]; idx += n_stages - 1
        f_refs = refs[idx: idx + n_stages]

        for b in range(b_tile):
            x = x_ref[b]
            for s in range(n_stages):
                h = jnp.dot(x, wb[2 * s][...],
                            preferred_element_type=jnp.float32)
                h = jnp.maximum(h + wb[2 * s + 1][...], 0.0)   # (S_s, 128) f32
                f_refs[s][b] = h
                if s != n_stages - 1:
                    x = jnp.dot(pdown[s][...], h.astype(compute_dtype),
                                preferred_element_type=jnp.float32
                                ).astype(compute_dtype)
    return kernel


# -------------------------------- Base module --------------------------------

class BasePallas:
    """JAX/Pallas analogue of AestheticPrediction Base."""

    def __init__(self, key, in_ch=3, stage_channels=(16, 32, 64),
                 compute_dtype=jnp.bfloat16):
        # TODO(synk): the pretrained inceptionresnetv2 / inceptionv3 backbone
        # (and its forward-hook machinery) has no clean in-script Pallas
        # equivalent; a deterministic synthetic backbone with the same
        # "stages -> collected feature blocks" role is used instead.
        self.in_ch = in_ch
        self.compute_dtype = compute_dtype   # MXU input dtype (epilogue is f32)
        self.channel_size = list(stage_channels)
        self.offsets = np.cumsum([0] + self.channel_size[:-1]).tolist()
        self.sum_c = sum(self.channel_size)
        self.c_pad = _round_up(self.sum_c, 128)   # lane-dense activation width
        self.params = []
        cin = in_ch
        for i, cout in enumerate(stage_channels):
            kw, kb = jax.random.split(jax.random.fold_in(key, i))
            w = jax.random.normal(kw, (cin, cout), jnp.float32) / jnp.sqrt(cin)
            b = jax.random.normal(kb, (cout,), jnp.float32) * 0.01
            self.params.append((w, b))
            cin = cout
        self._flat = tuple(a for wb in self.params for a in wb)
        self.features = []
        self._fn_cache = {}

    # freeze/unfreeze/train/eval: inference-only synthetic backbone -> no-ops.
    def freeze(self):   pass
    def unfreeze(self): pass
    def eval(self):     pass
    def train(self):    pass

    # ------------------------- builders (cached, jitted) ---------------------

    def _stage_sizes(self, h, w):
        sizes = [(h, w)]
        for _ in range(len(self.channel_size) - 1):
            ph, pw = sizes[-1]
            assert ph % 2 == 0 and pw % 2 == 0, "spatial must halve cleanly"
            sizes.append((ph // 2, pw // 2))
        return sizes

    def _prep_params(self, flat_params, cin, cin_pad):
        """Fold each stage's weight/bias into lane-dense operands:
        W_s -> (K_pad, c_pad) with its output channels at the stage's lane
        offset and its input rows at the previous stage's lane offset;
        b_s -> (1, c_pad) f32.  This replaces the old selector matmuls."""
        cdt = self.compute_dtype
        chans = self.channel_size
        offs = self.offsets
        c_pad = self.c_pad
        ops = []
        for s, c in enumerate(chans):
            w = flat_params[2 * s]          # (K_s, C_s)
            b = flat_params[2 * s + 1]      # (C_s,)
            off = offs[s]
            if s == 0:
                k_in, k_pad, k_off = cin, cin_pad, 0
            else:
                k_in, k_pad, k_off = chans[s - 1], c_pad, offs[s - 1]
            w_fold = jnp.pad(w, ((k_off, k_pad - k_off - k_in),
                                 (off, c_pad - off - c)))
            b_fold = jnp.pad(b, (off, c_pad - off - c)).reshape(1, c_pad)
            ops.append(w_fold.astype(cdt))
            ops.append(b_fold.astype(jnp.float32))
        return ops

    def _build_mlsp(self, n, cin, h, w, feature_type):
        n_stages = len(self.channel_size)
        sum_c, c_pad = self.sum_c, self.c_pad
        cin_pad = _round_up(max(cin, 8), 8)       # Cin=3 -> 8
        wide = feature_type == 'wide'
        out_rows = 25 if wide else 1
        cdt = self.compute_dtype
        sizes = self._stage_sizes(h, w)
        if wide:
            for (ph, pw) in sizes:
                # area interpolation == adaptive avg pool only when divisible
                assert ph % 5 == 0 and pw % 5 == 0, (ph, pw)

        n_tiles = _num_batch_tiles(n)             # 2 on v7x, 1 on v5e/v6e
        b_tile = n // n_tiles

        # Hoisted pool-matrix constants (baked into the compiled program).
        # Bin weights here (1/4, 1/16, 1.0) are exact in bf16; keep f32 for
        # general sizes.  At real Inception resolutions these dense operators
        # should become separable / VPU reshape-means (v7x 64 MiB VMEM).
        pdown = [jnp.asarray(_pool_matrix_np(*sizes[s], *sizes[s + 1]), cdt)
                 for s in range(n_stages - 1)]
        p5 = ([jnp.asarray(_pool_matrix_np(*sizes[s], 5, 5), cdt)
               for s in range(n_stages)] if wide else [])

        kernel = _make_mlsp_kernel(n_stages, b_tile, wide, cdt)

        def fn(img_nchw, *flat_params):
            x = jnp.transpose(img_nchw.astype(jnp.float32), (0, 2, 3, 1))
            x = x.reshape(n, h * w, cin)
            if cin_pad != cin:
                x = jnp.pad(x, ((0, 0), (0, 0), (0, cin_pad - cin)))
            x = x.astype(cdt)

            ops = [x]
            specs = [pl.BlockSpec((b_tile, h * w, cin_pad),
                                  lambda i: (i, 0, 0))]
            for p in self._prep_params(flat_params, cin, cin_pad):
                ops.append(p); specs.append(_full_spec(p))
            for p in pdown:
                ops.append(p); specs.append(_full_spec(p))
            for p in p5:
                ops.append(p); specs.append(_full_spec(p))

            out = pl.pallas_call(
                kernel,
                out_shape=jax.ShapeDtypeStruct((n, out_rows, c_pad),
                                               jnp.float32),
                grid_spec=pltpu.PrefetchScalarGridSpec(
                    num_scalar_prefetch=0,
                    grid=(n_tiles,),
                    in_specs=specs,
                    out_specs=pl.BlockSpec((b_tile, out_rows, c_pad),
                                           lambda i: (i, 0, 0)),
                ),
                compiler_params=pltpu.CompilerParams(
                    dimension_semantics=("parallel",)),
            )(*ops)

            if wide:
                out = out[:, :, :sum_c]                 # (N, 25, sumC)
                out = jnp.transpose(out, (0, 2, 1))     # (N, sumC, 25)
                return out.reshape(n, sum_c, 5, 5)
            return out[:, 0, :sum_c]                    # (N, sumC)

        return jax.jit(fn)

    def _build_backbone(self, n, cin, h, w):
        n_stages = len(self.channel_size)
        chans = list(self.channel_size)
        offs = self.offsets
        c_pad = self.c_pad
        cin_pad = _round_up(max(cin, 8), 8)
        cdt = self.compute_dtype
        sizes = self._stage_sizes(h, w)

        n_tiles = _num_batch_tiles(n)
        b_tile = n // n_tiles

        pdown = [jnp.asarray(_pool_matrix_np(*sizes[s], *sizes[s + 1]), cdt)
                 for s in range(n_stages - 1)]
        kernel = _make_backbone_kernel(n_stages, b_tile, cdt)

        def fn(img_nchw, *flat_params):
            x = jnp.transpose(img_nchw.astype(jnp.float32), (0, 2, 3, 1))
            x = x.reshape(n, h * w, cin)
            if cin_pad != cin:
                x = jnp.pad(x, ((0, 0), (0, 0), (0, cin_pad - cin)))
            x = x.astype(cdt)

            ops = [x]
            specs = [pl.BlockSpec((b_tile, h * w, cin_pad),
                                  lambda i: (i, 0, 0))]
            for p in self._prep_params(flat_params, cin, cin_pad):
                ops.append(p); specs.append(_full_spec(p))
            for p in pdown:
                ops.append(p); specs.append(_full_spec(p))

            # lane-dense (128-wide) feature writebacks; channels sliced outside
            out_shape = tuple(
                jax.ShapeDtypeStruct((n, sh * sw, c_pad), jnp.float32)
                for (sh, sw) in sizes)
            out_specs = tuple(
                pl.BlockSpec((b_tile, sh * sw, c_pad), lambda i: (i, 0, 0))
                for (sh, sw) in sizes)

            feats = pl.pallas_call(
                kernel,
                out_shape=out_shape,
                grid_spec=pltpu.PrefetchScalarGridSpec(
                    num_scalar_prefetch=0,
                    grid=(n_tiles,),
                    in_specs=specs,
                    out_specs=out_specs,
                ),
                compiler_params=pltpu.CompilerParams(
                    dimension_semantics=("parallel",)),
            )(*ops)
            # slice each stage's lane range, (N, S, C) -> NCHW (hook convention)
            result = []
            for f, (sh, sw), c, off in zip(feats, sizes, chans, offs):
                g = f[:, :, off:off + c].reshape(n, sh, sw, c)
                result.append(jnp.transpose(g, (0, 3, 1, 2)))
            return tuple(result)

        return jax.jit(fn)

    def _get_fn(self, kind, n, cin, h, w):
        key = (kind, n, cin, h, w)
        if key not in self._fn_cache:
            if kind == 'backbone':
                self._fn_cache[key] = self._build_backbone(n, cin, h, w)
            else:
                self._fn_cache[key] = self._build_mlsp(n, cin, h, w, kind)
        return self._fn_cache[key]

    # ------------------------------- public API -------------------------------

    def forward(self, img):
        n, c, h, w = img.shape
        feats = self._get_fn('backbone', n, c, h, w)(img, *self._flat)
        self.features = list(feats)

    __call__ = forward

    def get_MLSP(self, img, feature_type):
        if feature_type not in ('narrow', 'wide'):
            raise ValueError(feature_type)
        n, c, h, w = img.shape
        out = self._get_fn(feature_type, n, c, h, w)(img, *self._flat)
        self.features = []          # PyTorch clears the hook buffer afterwards
        return out


# ------------------------------ pure-JAX reference ---------------------------

def _ref_feats(img_nchw, params):
    x = jnp.transpose(img_nchw, (0, 2, 3, 1))
    feats = []
    for i, (w, b) in enumerate(params):
        x = jnp.maximum(jnp.einsum('nhwc,cd->nhwd', x, w) + b, 0.0)
        feats.append(x)
        if i != len(params) - 1:
            n, h, wd, c = x.shape
            x = x.reshape(n, h // 2, 2, wd // 2, 2, c).mean(axis=(2, 4))
    return feats


def _ref_mlsp(img_nchw, params, feature_type):
    feats = _ref_feats(img_nchw, params)
    if feature_type == 'narrow':
        return jnp.concatenate([f.mean(axis=(1, 2)) for f in feats], axis=1)
    out = []
    for f in feats:
        n, h, w, c = f.shape
        p = f.reshape(n, 5, h // 5, 5, w // 5, c).mean(axis=(2, 4))
        out.append(jnp.transpose(p, (0, 3, 1, 2)))
    return jnp.concatenate(out, axis=1)


# ----------------------------------- main ------------------------------------

if __name__ == "__main__":
    key = jax.random.PRNGKey(0)
    k_img, k_model = jax.random.split(key)

    # small image; spatial=20 so every stage's spatial size divides by 2 and 5
    img = jax.random.normal(k_img, (2, 3, 20, 20), jnp.float32)   # NCHW input

    # ---- f32 MXU inputs: tight check against the f32 reference ----
    model_f32 = BasePallas(k_model, compute_dtype=jnp.float32)
    narrow = model_f32.get_MLSP(img, 'narrow')
    wide = model_f32.get_MLSP(img, 'wide')
    model_f32.forward(img)
    jax.block_until_ready((narrow, wide, model_f32.features))

    sum_c = sum(model_f32.channel_size)
    assert narrow.shape == (2, sum_c), narrow.shape
    assert wide.shape == (2, sum_c, 5, 5), wide.shape

    ref_feats = _ref_feats(img, model_f32.params)
    ref_narrow = _ref_mlsp(img, model_f32.params, 'narrow')
    ref_wide = _ref_mlsp(img, model_f32.params, 'wide')
    np.testing.assert_allclose(np.asarray(narrow), np.asarray(ref_narrow),
                               rtol=1e-5, atol=1e-5)
    np.testing.assert_allclose(np.asarray(wide), np.asarray(ref_wide),
                               rtol=1e-5, atol=1e-5)
    for got, ref in zip(model_f32.features, ref_feats):
        np.testing.assert_allclose(
            np.asarray(got), np.asarray(jnp.transpose(ref, (0, 3, 1, 2))),
            rtol=1e-5, atol=1e-5)

    # ---- default bf16 MXU inputs (production), f32 accumulate + f32 epilogue ----
    model_bf16 = BasePallas(k_model)           # compute_dtype=bfloat16 default
    narrow16 = model_bf16.get_MLSP(img, 'narrow')
    wide16 = model_bf16.get_MLSP(img, 'wide')
    jax.block_until_ready((narrow16, wide16))
    np.testing.assert_allclose(np.asarray(narrow16), np.asarray(ref_narrow),
                               rtol=3e-2, atol=3e-2)
    np.testing.assert_allclose(np.asarray(wide16), np.asarray(ref_wide),
                               rtol=3e-2, atol=3e-2)

    print("KERNEL_OK")
</pallas_src>

<mosaic_0001>
module attributes {stable_mosaic.version = 11 : i64} {
  func.func @kernel(%arg0: i32, %arg1: memref<2x400x8xf32, #tpu.memory_space<vmem>>, %arg2: memref<8x128xf32, #tpu.memory_space<vmem>>, %arg3: memref<1x128xf32, #tpu.memory_space<vmem>>, %arg4: memref<128x128xf32, #tpu.memory_space<vmem>>, %arg5: memref<1x128xf32, #tpu.memory_space<vmem>>, %arg6: memref<128x128xf32, #tpu.memory_space<vmem>>, %arg7: memref<1x128xf32, #tpu.memory_space<vmem>>, %arg8: memref<100x400xf32, #tpu.memory_space<vmem>>, %arg9: memref<25x100xf32, #tpu.memory_space<vmem>>, %arg10: memref<2x1x128xf32, #tpu.memory_space<vmem>>) attributes {dimension_semantics = [#tpu.dimension_semantics<parallel>], iteration_bounds = array<i64: 1>, scalar_prefetch = 0 : i64, scratch_operands = 0 : i64, tpu.core_type = #tpu.core_type<tc>, window_params = [{transform_indices = @transform_0, window_bounds = array<i64: 2, 400, 8>}, {pipeline_mode = #tpu.pipeline_mode<synchronous>, transform_indices = @transform_1, window_bounds = array<i64: 8, 128>}, {pipeline_mode = #tpu.pipeline_mode<synchronous>, transform_indices = @transform_2, window_bounds = array<i64: 1, 128>}, {pipeline_mode = #tpu.pipeline_mode<synchronous>, transform_indices = @transform_3, window_bounds = array<i64: 128, 128>}, {pipeline_mode = #tpu.pipeline_mode<synchronous>, transform_indices = @transform_4, window_bounds = array<i64: 1, 128>}, {pipeline_mode = #tpu.pipeline_mode<synchronous>, transform_indices = @transform_5, window_bounds = array<i64: 128, 128>}, {pipeline_mode = #tpu.pipeline_mode<synchronous>, transform_indices = @transform_6, window_bounds = array<i64: 1, 128>}, {pipeline_mode = #tpu.pipeline_mode<synchronous>, transform_indices = @transform_7, window_bounds = array<i64: 100, 400>}, {pipeline_mode = #tpu.pipeline_mode<synchronous>, transform_indices = @transform_8, window_bounds = array<i64: 25, 100>}, {transform_indices = @transform_9, window_bounds = array<i64: 2, 1, 128>}]} {
    %c0 = arith.constant 0 : index
    %c0_0 = arith.constant 0 : index
    %c0_1 = arith.constant 0 : index
    %0 = vector.load %arg1[%c0, %c0_0, %c0_1] : memref<2x400x8xf32, #tpu.memory_space<vmem>>, vector<1x400x8xf32>
    %1 = vector.shape_cast %0 : vector<1x400x8xf32> to vector<400x8xf32>
    %cst = arith.constant 0.000000e+00 : f32
    %2 = vector.broadcast %cst : f32 to vector<1x128xf32>
    %c0_2 = arith.constant 0 : index
    %c0_3 = arith.constant 0 : index
    %3 = vector.load %arg2[%c0_2, %c0_3] : memref<8x128xf32, #tpu.memory_space<vmem>>, vector<8x128xf32>
    %c0_4 = arith.constant 0 : index
    %c0_5 = arith.constant 0 : index
    %4 = vector.load %arg3[%c0_4, %c0_5] : memref<1x128xf32, #tpu.memory_space<vmem>>, vector<1x128xf32>
    %cst_6 = arith.constant dense<0.000000e+00> : vector<400x128xf32>
    %5 = tpu.matmul %1, %3, %cst_6 {dimension_numbers = #tpu.dot_dimension_numbers<[1], [0], [0], [1], [0, 0, 1, 1], [], []>} : vector<400x8xf32>, vector<8x128xf32>, vector<400x128xf32> -> vector<400x128xf32>
    %6 = vector.broadcast %4 : vector<1x128xf32> to vector<400x128xf32>
    %7 = arith.addf %5, %6 : vector<400x128xf32>
    %cst_7 = arith.constant 0.000000e+00 : f32
    %8 = vector.broadcast %cst_7 : f32 to vector<400x128xf32>
    %9 = arith.maximumf %7, %8 : vector<400x128xf32>
    %cst_8 = arith.constant dense<0.000000e+00> : vector<128xf32>
    %10 = vector.multi_reduction <add>, %9, %cst_8 [0] : vector<400x128xf32> to vector<128xf32>
    %11 = vector.shape_cast %10 : vector<128xf32> to vector<1x128xf32>
    %cst_9 = arith.constant 4.000000e+02 : f32
    %12 = vector.broadcast %cst_9 : f32 to vector<1x128xf32>
    %13 = arith.divf %11, %12 : vector<1x128xf32>
    %14 = arith.addf %2, %13 : vector<1x128xf32>
    %c0_10 = arith.constant 0 : index
    %c0_11 = arith.constant 0 : index
    %15 = vector.load %arg8[%c0_10, %c0_11] : memref<100x400xf32, #tpu.memory_space<vmem>>, vector<100x400xf32>
    %cst_12 = arith.constant dense<0.000000e+00> : vector<100x128xf32>
    %16 = tpu.matmul %15, %9, %cst_12 {dimension_numbers = #tpu.dot_dimension_numbers<[1], [0], [0], [1], [0, 0, 1, 1], [], []>} : vector<100x400xf32>, vector<400x128xf32>, vector<100x128xf32> -> vector<100x128xf32>
    %c0_13 = arith.constant 0 : index
    %c0_14 = arith.constant 0 : index
    %17 = vector.load %arg4[%c0_13, %c0_14] : memref<128x128xf32, #tpu.memory_space<vmem>>, vector<128x128xf32>
    %c0_15 = arith.constant 0 : index
    %c0_16 = arith.constant 0 : index
    %18 = vector.load %arg5[%c0_15, %c0_16] : memref<1x128xf32, #tpu.memory_space<vmem>>, vector<1x128xf32>
    %cst_17 = arith.constant dense<0.000000e+00> : vector<100x128xf32>
    %19 = tpu.matmul %16, %17, %cst_17 {dimension_numbers = #tpu.dot_dimension_numbers<[1], [0], [0], [1], [0, 0, 1, 1], [], []>} : vector<100x128xf32>, vector<128x128xf32>, vector<100x128xf32> -> vector<100x128xf32>
    %20 = vector.broadcast %18 : vector<1x128xf32> to vector<100x128xf32>
    %21 = arith.addf %19, %20 : vector<100x128xf32>
    %cst_18 = arith.constant 0.000000e+00 : f32
    %22 = vector.broadcast %cst_18 : f32 to vector<100x128xf32>
    %23 = arith.maximumf %21, %22 : vector<100x128xf32>
    %cst_19 = arith.constant dense<0.000000e+00> : vector<128xf32>
    %24 = vector.multi_reduction <add>, %23, %cst_19 [0] : vector<100x128xf32> to vector<128xf32>
    %25 = vector.shape_cast %24 : vector<128xf32> to vector<1x128xf32>
    %cst_20 = arith.constant 1.000000e+02 : f32
    %26 = vector.broadcast %cst_20 : f32 to vector<1x128xf32>
    %27 = arith.divf %25, %26 : vector<1x128xf32>
    %28 = arith.addf %14, %27 : vector<1x128xf32>
    %c0_21 = arith.constant 0 : index
    %c0_22 = arith.constant 0 : index
    %29 = vector.load %arg9[%c0_21, %c0_22] : memref<25x100xf32, #tpu.memory_space<vmem>>, vector<25x100xf32>
    %cst_23 = arith.constant dense<0.000000e+00> : vector<25x128xf32>
    %30 = tpu.matmul %29, %23, %cst_23 {dimension_numbers = #tpu.dot_dimension_numbers<[1], [0], [0], [1], [0, 0, 1, 1], [], []>} : vector<25x100xf32>, vector<100x128xf32>, vector<25x128xf32> -> vector<25x128xf32>
    %c0_24 = arith.constant 0 : index
    %c0_25 = arith.constant 0 : index
    %31 = vector.load %arg6[%c0_24, %c0_25] : memref<128x128xf32, #tpu.memory_space<vmem>>, vector<128x128xf32>
    %c0_26 = arith.constant 0 : index
    %c0_27 = arith.constant 0 : index
    %32 = vector.load %arg7[%c0_26, %c0_27] : memref<1x128xf32, #tpu.memory_space<vmem>>, vector<1x128xf32>
    %cst_28 = arith.constant dense<0.000000e+00> : vector<25x128xf32>
    %33 = tpu.matmul %30, %31, %cst_28 {dimension_numbers = #tpu.dot_dimension_numbers<[1], [0], [0], [1], [0, 0, 1, 1], [], []>} : vector<25x128xf32>, vector<128x128xf32>, vector<25x128xf32> -> vector<25x128xf32>
    %34 = vector.broadcast %32 : vector<1x128xf32> to vector<25x128xf32>
    %35 = arith.addf %33, %34 : vector<25x128xf32>
    %cst_29 = arith.constant 0.000000e+00 : f32
    %36 = vector.broadcast %cst_29 : f32 to vector<25x128xf32>
    %37 = arith.maximumf %35, %36 : vector<25x128xf32>
    %cst_30 = arith.constant dense<0.000000e+00> : vector<128xf32>
    %38 = vector.multi_reduction <add>, %37, %cst_30 [0] : vector<25x128xf32> to vector<128xf32>
    %39 = vector.shape_cast %38 : vector<128xf32> to vector<1x128xf32>
    %cst_31 = arith.constant 2.500000e+01 : f32
    %40 = vector.broadcast %cst_31 : f32 to vector<1x128xf32>
    %41 = arith.divf %39, %40 : vector<1x128xf32>
    %42 = arith.addf %28, %41 : vector<1x128xf32>
    %c0_32 = arith.constant 0 : index
    %c0_33 = arith.constant 0 : index
    %c0_34 = arith.constant 0 : index
    %43 = vector.load %arg10[%c0_32, %c0_33, %c0_34] : memref<2x1x128xf32, #tpu.memory_space<vmem>>, vector<1x1x128xf32>
    %44 = vector.shape_cast %43 : vector<1x1x128xf32> to vector<1x128xf32>
    %45 = vector.shape_cast %42 : vector<1x128xf32> to vector<1x1x128xf32>
    tpu.vector_store %arg10[%c0_32, %c0_33, %c0_34], %45 {strides = array<i32>} : memref<2x1x128xf32, #tpu.memory_space<vmem>>, vector<1x1x128xf32>,
    %c1 = arith.constant 1 : index
    %c0_35 = arith.constant 0 : index
    %c0_36 = arith.constant 0 : index
    %46 = vector.load %arg1[%c1, %c0_35, %c0_36] : memref<2x400x8xf32, #tpu.memory_space<vmem>>, vector<1x400x8xf32>
    %47 = vector.shape_cast %46 : vector<1x400x8xf32> to vector<400x8xf32>
    %cst_37 = arith.constant 0.000000e+00 : f32
    %48 = vector.broadcast %cst_37 : f32 to vector<1x128xf32>
    %c0_38 = arith.constant 0 : index
    %c0_39 = arith.constant 0 : index
    %49 = vector.load %arg2[%c0_38, %c0_39] : memref<8x128xf32, #tpu.memory_space<vmem>>, vector<8x128xf32>
    %c0_40 = arith.constant 0 : index
    %c0_41 = arith.constant 0 : index
    %50 = vector.load %arg3[%c0_40, %c0_41] : memref<1x128xf32, #tpu.memory_space<vmem>>, vector<1x128xf32>
    %cst_42 = arith.constant dense<0.000000e+00> : vector<400x128xf32>
    %51 = tpu.matmul %47, %49, %cst_42 {dimension_numbers = #tpu.dot_dimension_numbers<[1], [0], [0], [1], [0, 0, 1, 1], [], []>} : vector<400x8xf32>, vector<8x128xf32>, vector<400x128xf32> -> vector<400x128xf32>
    %52 = vector.broadcast %50 : vector<1x128xf32> to vector<400x128xf32>
    %53 = arith.addf %51, %52 : vector<400x128xf32>
    %cst_43 = arith.constant 0.000000e+00 : f32
    %54 = vector.broadcast %cst_43 : f32 to vector<400x128xf32>
    %55 = arith.maximumf %53, %54 : vector<400x128xf32>
    %cst_44 = arith.constant dense<0.000000e+00> : vector<128xf32>
    %56 = vector.multi_reduction <add>, %55, %cst_44 [0] : vector<400x128xf32> to vector<128xf32>
    %57 = vector.shape_cast %56 : vector<128xf32> to vector<1x128xf32>
    %cst_45 = arith.constant 4.000000e+02 : f32
    %58 = vector.broadcast %cst_45 : f32 to vector<1x128xf32>
    %59 = arith.divf %57, %58 : vector<1x128xf32>
    %60 = arith.addf %48, %59 : vector<1x128xf32>
    %c0_46 = arith.constant 0 : index
    %c0_47 = arith.constant 0 : index
    %61 = vector.load %arg8[%c0_46, %c0_47] : memref<100x400xf32, #tpu.memory_space<vmem>>, vector<100x400xf32>
    %cst_48 = arith.constant dense<0.000000e+00> : vector<100x128xf32>
    %62 = tpu.matmul %61, %55, %cst_48 {dimension_numbers = #tpu.dot_dimension_numbers<[1], [0], [0], [1], [0, 0, 1, 1], [], []>} : vector<100x400xf32>, vector<400x128xf32>, vector<100x128xf32> -> vector<100x128xf32>
    %c0_49 = arith.constant 0 : index
    %c0_50 = arith.constant 0 : index
    %63 = vector.load %arg4[%c0_49, %c0_50] : memref<128x128xf32, #tpu.memory_space<vmem>>, vector<128x128xf32>
    %c0_51 = arith.constant 0 : index
    %c0_52 = arith.constant 0 : index
    %64 = vector.load %arg5[%c0_51, %c0_52] : memref<1x128xf32, #tpu.memory_space<vmem>>, vector<1x128xf32>
    %cst_53 = arith.constant dense<0.000000e+00> : vector<100x128xf32>
    %65 = tpu.matmul %62, %63, %cst_53 {dimension_numbers = #tpu.dot_dimension_numbers<[1], [0], [0], [1], [0, 0, 1, 1], [], []>} : vector<100x128xf32>, vector<128x128xf32>, vector<100x128xf32> -> vector<100x128xf32>
    %66 = vector.broadcast %64 : vector<1x128xf32> to vector<100x128xf32>
    %67 = arith.addf %65, %66 : vector<100x128xf32>
    %cst_54 = arith.constant 0.000000e+00 : f32
    %68 = vector.broadcast %cst_54 : f32 to vector<100x128xf32>
    %69 = arith.maximumf %67, %68 : vector<100x128xf32>
    %cst_55 = arith.constant dense<0.000000e+00> : vector<128xf32>
    %70 = vector.multi_reduction <add>, %69, %cst_55 [0] : vector<100x128xf32> to vector<128xf32>
    %71 = vector.shape_cast %70 : vector<128xf32> to vector<1x128xf32>
    %cst_56 = arith.constant 1.000000e+02 : f32
    %72 = vector.broadcast %cst_56 : f32 to vector<1x128xf32>
    %73 = arith.divf %71, %72 : vector<1x128xf32>
    %74 = arith.addf %60, %73 : vector<1x128xf32>
    %c0_57 = arith.constant 0 : index
    %c0_58 = arith.constant 0 : index
    %75 = vector.load %arg9[%c0_57, %c0_58] : memref<25x100xf32, #tpu.memory_space<vmem>>, vector<25x100xf32>
    %cst_59 = arith.constant dense<0.000000e+00> : vector<25x128xf32>
    %76 = tpu.matmul %75, %69, %cst_59 {dimension_numbers = #tpu.dot_dimension_numbers<[1], [0], [0], [1], [0, 0, 1, 1], [], []>} : vector<25x100xf32>, vector<100x128xf32>, vector<25x128xf32> -> vector<25x128xf32>
    %c0_60 = arith.constant 0 : index
    %c0_61 = arith.constant 0 : index
    %77 = vector.load %arg6[%c0_60, %c0_61] : memref<128x128xf32, #tpu.memory_space<vmem>>, vector<128x128xf32>
    %c0_62 = arith.constant 0 : index
    %c0_63 = arith.constant 0 : index
    %78 = vector.load %arg7[%c0_62, %c0_63] : memref<1x128xf32, #tpu.memory_space<vmem>>, vector<1x128xf32>
    %cst_64 = arith.constant dense<0.000000e+00> : vector<25x128xf32>
    %79 = tpu.matmul %76, %77, %cst_64 {dimension_numbers = #tpu.dot_dimension_numbers<[1], [0], [0], [1], [0, 0, 1, 1], [], []>} : vector<25x128xf32>, vector<128x128xf32>, vector<25x128xf32> -> vector<25x128xf32>
    %80 = vector.broadcast %78 : vector<1x128xf32> to vector<25x128xf32>
    %81 = arith.addf %79, %80 : vector<25x128xf32>
    %cst_65 = arith.constant 0.000000e+00 : f32
    %82 = vector.broadcast %cst_65 : f32 to vector<25x128xf32>
    %83 = arith.maximumf %81, %82 : vector<25x128xf32>
    %cst_66 = arith.constant dense<0.000000e+00> : vector<128xf32>
    %84 = vector.multi_reduction <add>, %83, %cst_66 [0] : vector<25x128xf32> to vector<128xf32>
    %85 = vector.shape_cast %84 : vector<128xf32> to vector<1x128xf32>
    %cst_67 = arith.constant 2.500000e+01 : f32
    %86 = vector.broadcast %cst_67 : f32 to vector<1x128xf32>
    %87 = arith.divf %85, %86 : vector<1x128xf32>
    %88 = arith.addf %74, %87 : vector<1x128xf32>
    %c1_68 = arith.constant 1 : index
    %c0_69 = arith.constant 0 : index
    %c0_70 = arith.constant 0 : index
    %89 = vector.load %arg10[%c1_68, %c0_69, %c0_70] : memref<2x1x128xf32, #tpu.memory_space<vmem>>, vector<1x1x128xf32>
    %90 = vector.shape_cast %89 : vector<1x1x128xf32> to vector<1x128xf32>
    %91 = vector.shape_cast %88 : vector<1x128xf32> to vector<1x1x128xf32>
    tpu.vector_store %arg10[%c1_68, %c0_69, %c0_70], %91 {strides = array<i32>} : memref<2x1x128xf32, #tpu.memory_space<vmem>>, vector<1x1x128xf32>,
    return
  }
  func.func @transform_0(%arg0: i32) -> (i32, i32, i32) {
    %c0_i32 = arith.constant 0 : i32
    %c0_i32_0 = arith.constant 0 : i32
    %c0_i32_1 = arith.constant 0 : i32
    return %arg0, %c0_i32, %c0_i32_0 : i32, i32, i32
  }
  func.func @transform_1(%arg0: i32) -> (i32, i32) {
    %c0_i32 = arith.constant 0 : i32
    %c0_i32_0 = arith.constant 0 : i32
    %c0_i32_1 = arith.constant 0 : i32
    return %c0_i32, %c0_i32_0 : i32, i32
  }
  func.func @transform_2(%arg0: i32) -> (i32, i32) {
    %c0_i32 = arith.constant 0 : i32
    %c0_i32_0 = arith.constant 0 : i32
    %c0_i32_1 = arith.constant 0 : i32
    return %c0_i32, %c0_i32_0 : i32, i32
  }
  func.func @transform_3(%arg0: i32) -> (i32, i32) {
    %c0_i32 = arith.constant 0 : i32
    %c0_i32_0 = arith.constant 0 : i32
    %c0_i32_1 = arith.constant 0 : i32
    return %c0_i32, %c0_i32_0 : i32, i32
  }
  func.func @transform_4(%arg0: i32) -> (i32, i32) {
    %c0_i32 = arith.constant 0 : i32
    %c0_i32_0 = arith.constant 0 : i32
    %c0_i32_1 = arith.constant 0 : i32
    return %c0_i32, %c0_i32_0 : i32, i32
  }
  func.func @transform_5(%arg0: i32) -> (i32, i32) {
    %c0_i32 = arith.constant 0 : i32
    %c0_i32_0 = arith.constant 0 : i32
    %c0_i32_1 = arith.constant 0 : i32
    return %c0_i32, %c0_i32_0 : i32, i32
  }
  func.func @transform_6(%arg0: i32) -> (i32, i32) {
    %c0_i32 = arith.constant 0 : i32
    %c0_i32_0 = arith.constant 0 : i32
    %c0_i32_1 = arith.constant 0 : i32
    return %c0_i32, %c0_i32_0 : i32, i32
  }
  func.func @transform_7(%arg0: i32) -> (i32, i32) {
    %c0_i32 = arith.constant 0 : i32
    %c0_i32_0 = arith.constant 0 : i32
    %c0_i32_1 = arith.constant 0 : i32
    return %c0_i32, %c0_i32_0 : i32, i32
  }
  func.func @transform_8(%arg0: i32) -> (i32, i32) {
    %c0_i32 = arith.constant 0 : i32
    %c0_i32_0 = arith.constant 0 : i32
    %c0_i32_1 = arith.constant 0 : i32
    return %c0_i32, %c0_i32_0 : i32, i32
  }
  func.func @transform_9(%arg0: i32) -> (i32, i32, i32) {
    %c0_i32 = arith.constant 0 : i32
    %c0_i32_0 = arith.constant 0 : i32
    %c0_i32_1 = arith.constant 0 : i32
    return %arg0, %c0_i32, %c0_i32_0 : i32, i32, i32
  }
}

</mosaic_0001>

<bundles_post_ra>
// kernel: fn.1
= control target key start
LH: loop header
LB: loop body
LE: loop exit
PB: predicated region body
PF: predicated region fallthrough
CT: control target
= control target key end

     0   :  { %vm88_vm0 = vcmask 64512   ;;  %s4046_s0 = inlined_call_operand.vmem [shape: f32[2,400,8], index: 0, kind: input, shape index: {}]   ;;  %s4047_s1 = inlined_call_operand.vmem [shape: f32[8,128], index: 1, kind: input, shape index: {}]   ;;  %s4048_s2 = inlined_call_operand.vmem [shape: f32[1,128], index: 2, kind: input, shape index: {}]   ;;  %s4049_s3 = inlined_call_operand.vmem [shape: f32[128,128], index: 3, kind: input, shape index: {}]   ;;  %s4050_s4 = inlined_call_operand.vmem [shape: f32[1,128], index: 4, kind: input, shape index: {}]   ;;  %s4051_s5 = inlined_call_operand.vmem [shape: f32[128,128], index: 5, kind: input, shape index: {}]   ;;  %s4052_s6 = inlined_call_operand.vmem [shape: f32[1,128], index: 6, kind: input, shape index: {}]   ;;  %s4053_s7 = inlined_call_operand.vmem [shape: f32[100,400], index: 7, kind: input, shape index: {}]   ;;  %s4054_s8 = inlined_call_operand.vmem [shape: f32[25,100], index: 8, kind: input, shape index: {}]   ;;  %s4055_s9 = inlined_call_operand.hbm [shape: f32[2,1,128], index: 9, kind: output, shape index: {}]  }
   0x1   :  { %v83_v0 = vld [vmem:[%s4047_s1] sm:$0xff] }
   0x2   :  { %v33_v1 = vld [vmem:[%s4046_s0] sm:$0xff]  ;;  %254 = vmatpush.msra.mxu0 %v83_v0 }
   0x3   :  { %2115 = vmatmul.msk.f32.vlgmr.msra.gmra.mxu0 %vm88_vm0, %v33_v1 }
   0x4   :  { %14 = vsyncpa [#allocation3], 0  ;;  %v34_v2 = vld [vmem:[%s4046_s0 + $0x8] sm:$0xff]  ;;  %v35_v3 = vld [vmem:[%s4046_s0 + $0x10] sm:$0xff]  ;;  %vm572_vm1 = vcmask 130048   ;;  %vm936_vm2 = vcmask 1043456  }
   0x5   :  { %v36_v4 = vld [vmem:[%s4046_s0 + $0x18] sm:$0xff]  ;;  %v37_v5 = vld [vmem:[%s4046_s0 + $0x20] sm:$0xff]  ;;  %v38_v6 = vld [vmem:[%s4046_s0 + $0x28] sm:$0xff]  ;;  %vm958_vm5 = vcmask 818176   ;;  %vm1058_vm6 = vcmask 1040384   ;;  %s2103_s10 = sshll.u32 %s4055_s9, 4  ;;  %s2104_s10 = int_to_ptr.hbm [resolvable:$true] %s2103_s10 }
   0x6   :  { %v39_v7 = vld [vmem:[%s4046_s0 + $0x30] sm:$0xff]  ;;  %v40_v8 = vld [vmem:[%s4046_s0 + $0x38] sm:$0xff]  ;;  %v41_v9 = vld [vmem:[%s4046_s0 + $0x40] sm:$0xff]  ;;  %s2382_s11 = smov 1  }
   0x7   :  { %v42_v10 = vld [vmem:[%s4046_s0 + $0x48] sm:$0xff]  ;;  %v43_v11 = vld [vmem:[%s4046_s0 + $0x50] sm:$0xff]  ;;  %v44_v12 = vld [vmem:[%s4046_s0 + $0x58] sm:$0xff] }
   0x8   :  { %v45_v13 = vld [vmem:[%s4046_s0 + $0x60] sm:$0xff]  ;;  %v46_v14 = vld [vmem:[%s4046_s0 + $0x68] sm:$0xff]  ;;  %v47_v15 = vld [vmem:[%s4046_s0 + $0x70] sm:$0xff] }
   0x9   :  { %v48_v16 = vld [vmem:[%s4046_s0 + $0x78] sm:$0xff]  ;;  %v49_v18 = vld [vmem:[%s4046_s0 + $0x80] sm:$0xff]  ;;  %v50_v20 = vld [vmem:[%s4046_s0 + $0x88] sm:$0xff] }
   0xa   :  { %v51_v22 = vld [vmem:[%s4046_s0 + $0x90] sm:$0xff]  ;;  %v52_v24 = vld [vmem:[%s4046_s0 + $0x98] sm:$0xff]  ;;  %v53_v26 = vld [vmem:[%s4046_s0 + $0xa0] sm:$0xff] }
   0xb   :  { %2116 = vmatmul.msk.f32.gmra.mxu0 %vm88_vm0, %v34_v2  ;;  %v54_v28 = vld [vmem:[%s4046_s0 + $0xa8] sm:$0xff]  ;;  %v55_v30 = vld [vmem:[%s4046_s0 + $0xb0] sm:$0xff]  ;;  %v56_v32 = vld [vmem:[%s4046_s0 + $0xb8] sm:$0xff] }
   0xc   :  { %v2534_v33 = vld [vmem:[%s4048_s2] ss:$0 sm:$0xff]  ;;  %v58_v54 = vld [vmem:[%s4046_s0 + $0xc8] sm:$0xff]  ;;  %v59_v2 = vld [vmem:[%s4046_s0 + $0xd0] sm:$0xff] }
   0xd   :  { %v57_v40 = vld [vmem:[%s4046_s0 + $0xc0] sm:$0xff] }
  0x13   :  { %2117 = vmatmul.msk.f32.gmra.mxu0 %vm88_vm0, %v35_v3 }
  0x1b   :  { %2118 = vmatmul.msk.f32.gmra.mxu0 %vm88_vm0, %v36_v4 }
  0x23   :  { %2119 = vmatmul.msk.f32.gmra.mxu0 %vm88_vm0, %v37_v5 }
  0x2b   :  { %2120 = vmatmul.msk.f32.gmra.mxu0 %vm88_vm0, %v38_v6 }
  0x33   :  { %2121 = vmatmul.msk.f32.gmra.mxu0 %vm88_vm0, %v39_v7 }
  0x3b   :  { %2122 = vmatmul.msk.f32.gmra.mxu0 %vm88_vm0, %v40_v8 }
  0x43   :  { %2123 = vmatmul.msk.f32.gmra.mxu0 %vm88_vm0, %v41_v9  ;;  %v60_v9 = vld [vmem:[%s4046_s0 + $0xd8] sm:$0xff] }
  0x4b   :  { %2124 = vmatmul.msk.f32.gmra.mxu0 %vm88_vm0, %v42_v10 }
  0x53   :  { %2125 = vmatmul.msk.f32.gmra.mxu0 %vm88_vm0, %v43_v11 }
  0x5b   :  { %2126 = vmatmul.msk.f32.gmra.mxu0 %vm88_vm0, %v44_v12 }
  0x63   :  { %2127 = vmatmul.msk.f32.gmra.mxu0 %vm88_vm0, %v45_v13 }
  0x6b   :  { %2128 = vmatmul.msk.f32.gmra.mxu0 %vm88_vm0, %v46_v14  ;;  %v61_v14 = vld [vmem:[%s4046_s0 + $0xe0] sm:$0xff] }
  0x73   :  { %2129 = vmatmul.msk.f32.gmra.mxu0 %vm88_vm0, %v47_v15 }
  0x7b   :  { %2130 = vmatmul.msk.f32.gmra.mxu0 %vm88_vm0, %v48_v16 }
  0x80   :  { %v256_v17 = vpop.f32.mrf.mxu0 }
  0x81   :  { %v257_v35 = vadd.f32 %v2534_v33, %v256_v17 }
  0x83   :  { %2131 = vmatmul.msk.f32.gmra.mxu0 %vm88_vm0, %v49_v18  ;;  %v2546_v41 = vmax.f32 %v257_v35, 0.0  ;;  %v65_v35 = vld [vmem:[%s4046_s0 + $0x100] sm:$0xff] }
  0x88   :  { %v259_v19 = vpop.f32.mrf.mxu0 }
  0x89   :  { %v260_v34 = vadd.f32 %v2534_v33, %v259_v19  ;;  %v62_v19 = vld [vmem:[%s4046_s0 + $0xe8] sm:$0xff] }
  0x8b   :  { %2132 = vmatmul.msk.f32.gmra.mxu0 %vm88_vm0, %v50_v20  ;;  %v2540_v37 = vmax.f32 %v260_v34, 0.0 }
  0x8d   :  { %v456_v44 = vadd.f32 %v2540_v37, %v2546_v41 }
  0x90   :  { %v262_v21 = vpop.f32.mrf.mxu0 }
  0x91   :  { %v263_v36 = vadd.f32 %v2534_v33, %v262_v21 }
  0x93   :  { %2133 = vmatmul.msk.f32.gmra.mxu0 %vm88_vm0, %v51_v22  ;;  %v2548_v42 = vmax.f32 %v263_v36, 0.0 }
  0x95   :  { %v457_v47 = vadd.f32 %v456_v44, %v2548_v42  ;;  %v68_v44 = vld [vmem:[%s4046_s0 + $0x118] sm:$0xff] }
  0x98   :  { %v265_v23 = vpop.f32.mrf.mxu0 }
  0x99   :  { %v266_v38 = vadd.f32 %v2534_v33, %v265_v23 }
  0x9b   :  { %2134 = vmatmul.msk.f32.gmra.mxu0 %vm88_vm0, %v52_v24  ;;  %v2553_v45 = vmax.f32 %v266_v38, 0.0  ;;  %v63_v24 = vld [vmem:[%s4046_s0 + $0xf0] sm:$0xff]  ;;  %v66_v38 = vld [vmem:[%s4046_s0 + $0x108] sm:$0xff] }
  0x9d   :  { %v458_v50 = vadd.f32 %v457_v47, %v2553_v45  ;;  %v70_v47 = vld [vmem:[%s4046_s0 + $0x128] sm:$0xff] }
  0xa0   :  { %v268_v25 = vpop.f32.mrf.mxu0 }
  0xa1   :  { %v269_v43 = vadd.f32 %v2534_v33, %v268_v25 }
  0xa3   :  { %2135 = vmatmul.msk.f32.gmra.mxu0 %vm88_vm0, %v53_v26  ;;  %v2558_v48 = vmax.f32 %v269_v43, 0.0 }
  0xa5   :  { %v459_v55 = vadd.f32 %v458_v50, %v2558_v48 }
  0xa8   :  { %v271_v27 = vpop.f32.mrf.mxu0 }
  0xa9   :  { %v272_v46 = vadd.f32 %v2534_v33, %v271_v27 }
  0xab   :  { %2136 = vmatmul.msk.f32.gmra.mxu0 %vm88_vm0, %v54_v28  ;;  %v2562_v51 = vmax.f32 %v272_v46, 0.0 }
  0xad   :  { %v460_v58 = vadd.f32 %v459_v55, %v2562_v51 }
  0xb0   :  { %v274_v29 = vpop.f32.mrf.mxu0 }
  0xb1   :  { %v275_v49 = vadd.f32 %v2534_v33, %v274_v29  ;;  %v64_v29 = vld [vmem:[%s4046_s0 + $0xf8] sm:$0xff] }
  0xb3   :  { %2137 = vmatmul.msk.f32.gmra.mxu0 %vm88_vm0, %v55_v30  ;;  %v2569_v56 = vmax.f32 %v275_v49, 0.0 }
  0xb5   :  { %v461_v61 = vadd.f32 %v460_v58, %v2569_v56 }
  0xb8   :  { %v277_v31 = vpop.f32.mrf.mxu0 }
  0xb9   :  { %v278_v52 = vadd.f32 %v2534_v33, %v277_v31 }
  0xbb   :  { %2138 = vmatmul.msk.f32.gmra.mxu0 %vm88_vm0, %v56_v32  ;;  %v2573_v59 = vmax.f32 %v278_v52, 0.0 }
  0xbd   :  { %v462_v63 = vadd.f32 %v461_v61, %v2573_v59 }
  0xc0   :  { %v280_v39 = vpop.f32.mrf.mxu0 }
  0xc1   :  { %v281_v57 = vadd.f32 %v2534_v33, %v280_v39 }
  0xc3   :  { %2139 = vmatmul.msk.f32.gmra.mxu0 %vm88_vm0, %v57_v40  ;;  %v414_v62 = vmax.f32 %v281_v57, 0.0  ;;  %v67_v40 = vld [vmem:[%s4046_s0 + $0x110] sm:$0xff] }
  0xc5   :  { %v463_v3 = vadd.f32 %v462_v63, %v414_v62 }
  0xc8   :  { %v283_v53 = vpop.f32.mrf.mxu0 }
  0xc9   :  { %v284_v60 = vadd.f32 %v2534_v33, %v283_v53  ;;  %v72_v53 = vld [vmem:[%s4046_s0 + $0x138] sm:$0xff] }
  0xcb   :  { %2140 = vmatmul.msk.f32.gmra.mxu0 %vm88_vm0, %v58_v54  ;;  %v415_v0 = vmax.f32 %v284_v60, 0.0 }
  0xcd   :  { %v464_v5 = vadd.f32 %v463_v3, %v415_v0 }
  0xd0   :  { %v286_v1 = vpop.f32.mrf.mxu0 }
  0xd1   :  { %v287_v4 = vadd.f32 %v2534_v33, %v286_v1 }
  0xd3   :  { %v416_v6 = vmax.f32 %v287_v4, 0.0  ;;  %2141 = vmatmul.msk.f32.gmra.mxu0 %vm88_vm0, %v59_v2  ;;  %v73_v2 = vld [vmem:[%s4046_s0 + $0x140] sm:$0xff] }
  0xd5   :  { %v465_v7 = vadd.f32 %v464_v5, %v416_v6 }
  0xd8   :  { %v289_v8 = vpop.f32.mrf.mxu0 }
  0xd9   :  { %v290_v10 = vadd.f32 %v2534_v33, %v289_v8 }
  0xdb   :  { %v417_v11 = vmax.f32 %v290_v10, 0.0  ;;  %2142 = vmatmul.msk.f32.gmra.mxu0 %vm88_vm0, %v60_v9 }
  0xdd   :  { %v466_v12 = vadd.f32 %v465_v7, %v417_v11 }
  0xe0   :  { %v292_v13 = vpop.f32.mrf.mxu0 }
  0xe1   :  { %v293_v15 = vadd.f32 %v2534_v33, %v292_v13 }
  0xe3   :  { %v418_v16 = vmax.f32 %v293_v15, 0.0  ;;  %2143 = vmatmul.msk.f32.gmra.mxu0 %vm88_vm0, %v61_v14  ;;  %v74_v14 = vld [vmem:[%s4046_s0 + $0x148] sm:$0xff] }
  0xe5   :  { %v467_v17 = vadd.f32 %v466_v12, %v418_v16 }
  0xe8   :  { %v295_v18 = vpop.f32.mrf.mxu0 }
  0xe9   :  { %v296_v20 = vadd.f32 %v2534_v33, %v295_v18 }
  0xeb   :  { %v419_v21 = vmax.f32 %v296_v20, 0.0  ;;  %2144 = vmatmul.msk.f32.gmra.mxu0 %vm88_vm0, %v62_v19 }
  0xed   :  { %v468_v22 = vadd.f32 %v467_v17, %v419_v21 }
  0xf0   :  { %v298_v23 = vpop.f32.mrf.mxu0 }
  0xf1   :  { %v299_v25 = vadd.f32 %v2534_v33, %v298_v23 }
  0xf3   :  { %v420_v26 = vmax.f32 %v299_v25, 0.0  ;;  %2145 = vmatmul.msk.f32.gmra.mxu0 %vm88_vm0, %v63_v24 }
  0xf5   :  { %v469_v27 = vadd.f32 %v468_v22, %v420_v26 }
  0xf8   :  { %v301_v28 = vpop.f32.mrf.mxu0 }
  0xf9   :  { %v302_v30 = vadd.f32 %v2534_v33, %v301_v28 }
  0xfb   :  { %v421_v31 = vmax.f32 %v302_v30, 0.0  ;;  %2146 = vmatmul.msk.f32.gmra.mxu0 %vm88_vm0, %v64_v29 }
  0xfd   :  { %612 = vmatpush.msra.mxu1 %v421_v31  ;;  %2301 = vmatpush.msra.mxu2 %v421_v31  ;;  %v2609_v32 = vadd.f32 %v469_v27, %v421_v31  ;;  %v77_v31 = vld [vmem:[%s4046_s0 + $0x160] sm:$0xff] }
  0xff   :  { %613 = vmatpush.msra.mxu1 %v420_v26  ;;  %2302 = vmatpush.msra.mxu2 %v420_v26  ;;  %v76_v26 = vld [vmem:[%s4046_s0 + $0x158] sm:$0xff] }
 0x100   :  { %v304_v34 = vpop.f32.mrf.mxu0 }
 0x101   :  { %614 = vmatpush.msra.mxu1 %v419_v21  ;;  %2303 = vmatpush.msra.mxu2 %v419_v21  ;;  %v75_v21 = vld [vmem:[%s4046_s0 + $0x150] sm:$0xff] }
 0x103   :  { %2147 = vmatmul.msk.f32.gmra.mxu0 %vm88_vm0, %v65_v35  ;;  %615 = vmatpush.msra.mxu1 %v418_v16 }
 0x104   :  { %2304 = vmatpush.msra.mxu2 %v418_v16 }
 0x105   :  { %616 = vmatpush.msra.mxu1 %v417_v11 }
 0x106   :  { %2305 = vmatpush.msra.mxu2 %v417_v11 }
 0x107   :  { %617 = vmatpush.msra.mxu1 %v416_v6 }
 0x108   :  { %2306 = vmatpush.msra.mxu2 %v416_v6  ;;  %v307_v36 = vpop.f32.mrf.mxu0 }
 0x109   :  { %618 = vmatpush.msra.mxu1 %v415_v0  ;;  %v2659_v49 = vadd.f32 %v2534_v33, %v307_v36 }
 0x10a   :  { %2307 = vmatpush.msra.mxu2 %v415_v0 }
 0x10b   :  { %2148 = vmatmul.msk.f32.gmra.mxu0 %vm88_vm0, %v66_v38  ;;  %619 = vmatpush.msra.mxu1 %v414_v62  ;;  %v423_v55 = vmax.f32 %v2659_v49, 0.0  ;;  %v78_v38 = vld [vmem:[%s4046_s0 + $0x168] sm:$0xff] }
 0x10c   :  { %2308 = vmatpush.msra.mxu2 %v414_v62  ;;  %v521_v49 = vld [vmem:[%s4053_s7 + $0x8] sm:$0xff] }
 0x10d   :  { %620 = vmatpush.msra.mxu1 %v2573_v59 }
 0x10e   :  { %2309 = vmatpush.msra.mxu2 %v2573_v59 }
 0x10f   :  { %621 = vmatpush.msra.mxu1 %v2569_v56 }
 0x110   :  { %2310 = vmatpush.msra.mxu2 %v2569_v56  ;;  %v310_v39 = vpop.f32.mrf.mxu0 }
 0x111   :  { %622 = vmatpush.msra.mxu1 %v2562_v51  ;;  %v2662_v50 = vadd.f32 %v2534_v33, %v310_v39 }
 0x112   :  { %2311 = vmatpush.msra.mxu2 %v2562_v51 }
 0x113   :  { %2149 = vmatmul.msk.f32.gmra.mxu0 %vm88_vm0, %v67_v40  ;;  %623 = vmatpush.msra.mxu1 %v2558_v48  ;;  %v424_v57 = vmax.f32 %v2662_v50, 0.0 }
 0x114   :  { %2312 = vmatpush.msra.mxu2 %v2558_v48  ;;  %v71_v48 = vld [vmem:[%s4046_s0 + $0x130] sm:$0xff] }
 0x115   :  { %624 = vmatpush.msra.mxu1 %v2553_v45 }
 0x116   :  { %2313 = vmatpush.msra.mxu2 %v2553_v45 }
 0x117   :  { %625 = vmatpush.msra.mxu1 %v2548_v42 }
 0x118   :  { %2314 = vmatpush.msra.mxu2 %v2548_v42  ;;  %v313_v43 = vpop.f32.mrf.mxu0  ;;  %v69_v42 = vld [vmem:[%s4046_s0 + $0x120] sm:$0xff] }
 0x119   :  { %626 = vmatpush.msra.mxu1 %v2540_v37  ;;  %v2669_v54 = vadd.f32 %v2534_v33, %v313_v43 }
 0x11a   :  { %2315 = vmatpush.msra.mxu2 %v2540_v37 }
 0x11b   :  { %2150 = vmatmul.msk.f32.gmra.mxu0 %vm88_vm0, %v68_v44  ;;  %627 = vmatpush.msra.mxu1 %v2546_v41  ;;  %v425_v60 = vmax.f32 %v2669_v54, 0.0  ;;  %v564_v54 = vld [vmem:[%s4053_s7 + $0x160] sm:$0xff] }
 0x11c   :  { %2316 = vmatpush.msra.mxu2 %v2546_v41  ;;  %v2655_v41 = vadd.f32 %v2534_v33, %v304_v34 }
 0x11e   :  { %v422_v51 = vmax.f32 %v2655_v41, 0.0 }
 0x120   :  { %v316_v45 = vpop.f32.mrf.mxu0  ;;  %v471_v58 = vadd.f32 %v2609_v32, %v422_v51 }
 0x121   :  { %v2673_v56 = vadd.f32 %v2534_v33, %v316_v45  ;;  %v79_v45 = vld [vmem:[%s4046_s0 + $0x170] sm:$0xff] }
 0x122   :  { %v472_v61 = vadd.f32 %v471_v58, %v423_v55 }
 0x123   :  { %2151 = vmatmul.msk.f32.gmra.mxu0 %vm88_vm0, %v69_v42  ;;  %v426_v63 = vmax.f32 %v2673_v56, 0.0 }
 0x124   :  { %v473_v0 = vadd.f32 %v472_v61, %v424_v57 }
 0x126   :  { %v474_v5 = vadd.f32 %v473_v0, %v425_v60  ;;  %v81_v0 = vld [vmem:[%s4046_s0 + $0x180] sm:$0xff] }
 0x128   :  { %v319_v46 = vpop.f32.mrf.mxu0  ;;  %v475_v8 = vadd.f32 %v474_v5, %v426_v63 }
 0x129   :  { %v2681_v59 = vadd.f32 %v2534_v33, %v319_v46 }
 0x12b   :  { %2152 = vmatmul.msk.f32.gmra.mxu0 %vm88_vm0, %v70_v47  ;;  %v427_v4 = vmax.f32 %v2681_v59, 0.0  ;;  %v568_v59 = vld [vmem:[%s4053_s7 + $0x180] sm:$0xf] }
 0x12d   :  { %v476_v10 = vadd.f32 %v475_v8, %v427_v4 }
 0x130   :  { %v322_v37 = vpop.f32.mrf.mxu0 }
 0x131   :  { %v2687_v62 = vadd.f32 %v2534_v33, %v322_v37 }
 0x133   :  { %2153 = vmatmul.msk.f32.gmra.mxu0 %vm88_vm0, %v71_v48  ;;  %v428_v7 = vmax.f32 %v2687_v62, 0.0  ;;  %v80_v48 = vld [vmem:[%s4046_s0 + $0x178] sm:$0xff] }
 0x135   :  { %v477_v12 = vadd.f32 %v476_v10, %v428_v7 }
 0x138   :  { %v325_v52 = vpop.f32.mrf.mxu0 }
 0x139   :  { %v2696_v3 = vadd.f32 %v2534_v33, %v325_v52 }
 0x13b   :  { %2154 = vmatmul.msk.f32.gmra.mxu0 %vm88_vm0, %v72_v53  ;;  %v429_v9 = vmax.f32 %v2696_v3, 0.0  ;;  %v556_v3 = vld [vmem:[%s4053_s7 + $0x120] sm:$0xff] }
 0x13c   :  { %655 = vmatmul.f32.vlgmr.msra.gmra.mxu2 %v556_v3 }
 0x13d   :  { %v478_v16 = vadd.f32 %v477_v12, %v429_v9 }
 0x140   :  { %v328_v1 = vpop.f32.mrf.mxu0 }
 0x141   :  { %v2702_v6 = vadd.f32 %v2534_v33, %v328_v1 }
 0x143   :  { %2155 = vmatmul.msk.f32.gmra.mxu0 %vm88_vm0, %v73_v2  ;;  %v430_v11 = vmax.f32 %v2702_v6, 0.0  ;;  %v82_v2 = vld [vmem:[%s4046_s0 + $0x188] sm:$0xff]  ;;  %v560_v6 = vld [vmem:[%s4053_s7 + $0x140] sm:$0xff] }
 0x144   :  { %658 = vmatmul.f32.gmra.mxu2 %v560_v6 }
 0x145   :  { %v479_v18 = vadd.f32 %v478_v16, %v430_v11 }
 0x148   :  { %v331_v13 = vpop.f32.mrf.mxu0 }
 0x149   :  { %v332_v15 = vadd.f32 %v2534_v33, %v331_v13  ;;  %v524_v13 = vld [vmem:[%s4053_s7 + $0x20] sm:$0xff] }
 0x14b   :  { %2156 = vmatmul.msk.f32.gmra.mxu0 %vm88_vm0, %v74_v14  ;;  %v431_v17 = vmax.f32 %v332_v15, 0.0 }
 0x14c   :  { %661 = vmatmul.f32.gmra.mxu2 %v564_v54 }
 0x14d   :  { %v480_v19 = vadd.f32 %v479_v18, %v431_v17 }
 0x150   :  { %v334_v20 = vpop.f32.mrf.mxu0 }
 0x151   :  { %v335_v22 = vadd.f32 %v2534_v33, %v334_v20 }
 0x153   :  { %2157 = vmatmul.msk.f32.gmra.mxu0 %vm88_vm0, %v75_v21  ;;  %v432_v23 = vmax.f32 %v335_v22, 0.0 }
 0x154   :  { %664 = vmatmul.f32.gmra.mxu2 %v568_v59 }
 0x155   :  { %v481_v24 = vadd.f32 %v480_v19, %v432_v23 }
 0x158   :  { %v337_v25 = vpop.f32.mrf.mxu0 }
 0x159   :  { %v338_v27 = vadd.f32 %v2534_v33, %v337_v25 }
 0x15b   :  { %2158 = vmatmul.msk.f32.gmra.mxu0 %vm88_vm0, %v76_v26  ;;  %v433_v28 = vmax.f32 %v338_v27, 0.0 }
 0x15d   :  { %v482_v29 = vadd.f32 %v481_v24, %v433_v28 }
 0x160   :  { %v340_v30 = vpop.f32.mrf.mxu0 }
 0x161   :  { %v341_v32 = vadd.f32 %v2534_v33, %v340_v30 }
 0x163   :  { %2159 = vmatmul.msk.f32.gmra.mxu0 %vm88_vm0, %v77_v31  ;;  %v434_v34 = vmax.f32 %v341_v32, 0.0  ;;  %v533_v31 = vld [vmem:[%s4053_s7 + $0x68] sm:$0xff] }
 0x165   :  { %v483_v35 = vadd.f32 %v482_v29, %v434_v34 }
 0x168   :  { %v343_v36 = vpop.f32.mrf.mxu0 }
 0x169   :  { %v344_v39 = vadd.f32 %v2534_v33, %v343_v36 }
 0x16b   :  { %2160 = vmatmul.msk.f32.gmra.mxu0 %vm88_vm0, %v78_v38  ;;  %v435_v40 = vmax.f32 %v344_v39, 0.0 }
 0x16d   :  { %v484_v43 = vadd.f32 %v483_v35, %v435_v40 }
 0x170   :  { %v346_v44 = vpop.f32.mrf.mxu0 }
 0x171   :  { %v347_v42 = vadd.f32 %v2534_v33, %v346_v44 }
 0x173   :  { %2161 = vmatmul.msk.f32.gmra.mxu0 %vm88_vm0, %v79_v45  ;;  %v436_v46 = vmax.f32 %v347_v42, 0.0  ;;  %v537_v45 = vld [vmem:[%s4053_s7 + $0x88] sm:$0xff] }
 0x175   :  { %v485_v47 = vadd.f32 %v484_v43, %v436_v46  ;;  %v532_v43 = vld [vmem:[%s4053_s7 + $0x60] sm:$0xff] }
 0x178   :  { %v349_v37 = vpop.f32.mrf.mxu0 }
 0x179   :  { %v350_v52 = vadd.f32 %v2534_v33, %v349_v37  ;;  %v536_v37 = vld [vmem:[%s4053_s7 + $0x80] sm:$0xff] }
 0x17b   :  { %2162 = vmatmul.msk.f32.gmra.mxu0 %vm88_vm0, %v80_v48  ;;  %v437_v53 = vmax.f32 %v350_v52, 0.0  ;;  %v541_v52 = vld [vmem:[%s4053_s7 + $0xa8] sm:$0xff] }
 0x17d   :  { %668 = vmatpush.msrb.mxu2 %v437_v53  ;;  %v486_v58 = vadd.f32 %v485_v47, %v437_v53 }
 0x17f   :  { %669 = vmatpush.msrb.mxu2 %v436_v46 }
 0x180   :  { %v352_v61 = vpop.f32.mrf.mxu0 }
 0x181   :  { %670 = vmatpush.msrb.mxu2 %v435_v40  ;;  %v353_v41 = vadd.f32 %v2534_v33, %v352_v61 }
 0x183   :  { %2163 = vmatmul.msk.f32.gmra.mxu0 %vm88_vm0, %v81_v0  ;;  %671 = vmatpush.msrb.mxu2 %v434_v34  ;;  %v540_v0 = vld [vmem:[%s4053_s7 + $0xa0] sm:$0xff] }
 0x185   :  { %672 = vmatpush.msrb.mxu2 %v433_v28  ;;  %v528_v28 = vld [vmem:[%s4053_s7 + $0x40] sm:$0xff] }
 0x187   :  { %673 = vmatpush.msrb.mxu2 %v432_v23 }
 0x188   :  { %v355_v1 = vpop.f32.mrf.mxu0 }
 0x189   :  { %674 = vmatpush.msrb.mxu2 %v431_v17  ;;  %v529_v17 = vld [vmem:[%s4053_s7 + $0x48] sm:$0xff] }
 0x18b   :  { %2164 = vmatmul.msk.f32.gmra.mxu0 %vm88_vm0, %v82_v2  ;;  %675 = vmatpush.msrb.mxu2 %v430_v11  ;;  %v545_v2 = vld [vmem:[%s4053_s7 + $0xc8] sm:$0xff] }
 0x18d   :  { %676 = vmatpush.msrb.mxu2 %v429_v9 }
 0x18f   :  { %677 = vmatpush.msrb.mxu2 %v428_v7 }
 0x190   :  { %v358_v5 = vpop.f32.mrf.mxu0 }
 0x191   :  { %678 = vmatpush.msrb.mxu2 %v427_v4  ;;  %v359_v4 = vadd.f32 %v2534_v33, %v358_v5 }
 0x193   :  { %679 = vmatpush.msrb.mxu2 %v426_v63  ;;  %v2794_v63 = vmax.f32 %v353_v41, 0.0  ;;  %v2800_v10 = vmax.f32 %v359_v4, 0.0 }
 0x195   :  { %680 = vmatpush.msrb.mxu2 %v425_v60  ;;  %v525_v60 = vld [vmem:[%s4053_s7 + $0x28] sm:$0xff]  ;;  %v487_v12 = vadd.f32 %v486_v58, %v2794_v63 }
 0x197   :  { %681 = vmatpush.msrb.mxu2 %v424_v57  ;;  %v356_v57 = vadd.f32 %v2534_v33, %v355_v1 }
 0x198   :  { %v361_v62 = vpop.f32.mrf.mxu0 }
 0x199   :  { %682 = vmatpush.msrb.mxu2 %v423_v55  ;;  %v2797_v8 = vmax.f32 %v356_v57, 0.0  ;;  %v362_v9 = vadd.f32 %v2534_v33, %v361_v62  ;;  %v544_v62 = vld [vmem:[%s4053_s7 + $0xc0] sm:$0xff] }
 0x19b   :  { %683 = vmatpush.msrb.mxu2 %v422_v51  ;;  %v520_v51 = vld [vmem:[%s4053_s7] sm:$0xff]  ;;  %v2807_v14 = vmax.f32 %v362_v9, 0.0  ;;  %v488_v15 = vadd.f32 %v487_v12, %v2797_v8 }
 0x19c   :  { %684 = vmatmul.f32.vlgmr.msrb.gmra.mxu2 %v521_v49  ;;  %628 = vmatmul.f32.vlgmr.msra.gmra.mxu1 %v520_v51  ;;  %v553_v51 = vld [vmem:[%s4053_s7 + $0x108] sm:$0xff] }
 0x19d   :  { %v489_v19 = vadd.f32 %v488_v15, %v2800_v10 }
 0x19f   :  { %v490_v22 = vadd.f32 %v489_v19, %v2807_v14 }
 0x1a0   :  { %v364_v56 = vpop.f32.mrf.mxu0 }
 0x1a1   :  { %v365_v11 = vadd.f32 %v2534_v33, %v364_v56  ;;  %v549_v56 = vld [vmem:[%s4053_s7 + $0xe8] sm:$0xff] }
 0x1a3   :  { %v2814_v18 = vmax.f32 %v365_v11, 0.0 }
 0x1a4   :  { %687 = vmatmul.f32.gmra.mxu2 %v525_v60  ;;  %631 = vmatmul.f32.gmra.mxu1 %v524_v13 }
 0x1a5   :  { %v491_v25 = vadd.f32 %v490_v22, %v2814_v18 }
 0x1a8   :  { %v367_v50 = vpop.f32.mrf.mxu0 }
 0x1a9   :  { %v368_v16 = vadd.f32 %v2534_v33, %v367_v50 }
 0x1ab   :  { %v2819_v23 = vmax.f32 %v368_v16, 0.0 }
 0x1ac   :  { %690 = vmatmul.f32.gmra.mxu2 %v529_v17  ;;  %634 = vmatmul.f32.gmra.mxu1 %v528_v28  ;;  %v569_v28 = vld [vmem:[%s4053_s7 + $0x188] sm:$0xf] }
 0x1ad   :  { %v492_v29 = vadd.f32 %v491_v25, %v2819_v23 }
 0x1b0   :  { %v370_v55 = vpop.f32.mrf.mxu0 }
 0x1b1   :  { %v371_v20 = vadd.f32 %v2534_v33, %v370_v55  ;;  %v548_v55 = vld [vmem:[%s4053_s7 + $0xe0] sm:$0xff] }
 0x1b3   :  { %v2823_v26 = vmax.f32 %v371_v20, 0.0 }
 0x1b4   :  { %693 = vmatmul.f32.gmra.mxu2 %v533_v31  ;;  %637 = vmatmul.f32.gmra.mxu1 %v532_v43  ;;  %v538_v31 = vld [vmem:[%s4053_s7 + $0x90] sm:$0xff] }
 0x1b5   :  { %v493_v32 = vadd.f32 %v492_v29, %v2823_v26  ;;  %v534_v29 = vld [vmem:[%s4053_s7 + $0x70] sm:$0xff] }
 0x1b8   :  { %v373_v7 = vpop.f32.mrf.mxu0 }
 0x1b9   :  { %v374_v24 = vadd.f32 %v2534_v33, %v373_v7  ;;  %v552_v7 = vld [vmem:[%s4053_s7 + $0x100] sm:$0xff] }
 0x1bb   :  { %v2830_v30 = vmax.f32 %v374_v24, 0.0 }
 0x1bc   :  { %696 = vmatmul.f32.gmra.mxu2 %v537_v45  ;;  %640 = vmatmul.f32.gmra.mxu1 %v536_v37  ;;  %v535_v37 = vld [vmem:[%s4053_s7 + $0x78] sm:$0xff] }
 0x1bd   :  { %v494_v36 = vadd.f32 %v493_v32, %v2830_v30 }
 0x1c0   :  { %v376_v21 = vpop.f32.mrf.mxu0 }
 0x1c1   :  { %v377_v27 = vadd.f32 %v2534_v33, %v376_v21 }
 0x1c3   :  { %v2836_v34 = vmax.f32 %v377_v27, 0.0  ;;  %v566_v27 = vld [vmem:[%s4053_s7 + $0x170] sm:$0xff] }
 0x1c4   :  { %699 = vmatmul.f32.gmra.mxu2 %v541_v52  ;;  %643 = vmatmul.f32.gmra.mxu1 %v540_v0  ;;  %v539_v52 = vld [vmem:[%s4053_s7 + $0x98] sm:$0xff] }
 0x1c5   :  { %v495_v39 = vadd.f32 %v494_v36, %v2836_v34  ;;  %v547_v0 = vld [vmem:[%s4053_s7 + $0xd8] sm:$0xff] }
 0x1c8   :  { %v379_v35 = vpop.f32.mrf.mxu0 }
 0x1c9   :  { %v380_v38 = vadd.f32 %v2534_v33, %v379_v35  ;;  %v546_v35 = vld [vmem:[%s4053_s7 + $0xd0] sm:$0xff] }
 0x1cb   :  { %v2841_v40 = vmax.f32 %v380_v38, 0.0  ;;  %v550_v38 = vld [vmem:[%s4053_s7 + $0xf0] sm:$0xff] }
 0x1cc   :  { %702 = vmatmul.f32.gmra.mxu2 %v545_v2  ;;  %646 = vmatmul.f32.gmra.mxu1 %v544_v62  ;;  %v551_v2 = vld [vmem:[%s4053_s7 + $0xf8] sm:$0xff] }
 0x1cd   :  { %v496_v44 = vadd.f32 %v495_v39, %v2841_v40  ;;  %v851_v62 = vld [vmem:[%s4049_s3 + $0x78] sm:$0xff] }
 0x1ce   :  { %856 = vmatpush.msra.mxu2 %v851_v62  ;;  %1892 = vmatpush.msrb.mxu0 %v851_v62 }
 0x1d0   :  { %v382_v42 = vpop.f32.mrf.mxu0 }
 0x1d1   :  { %v383_v46 = vadd.f32 %v2534_v33, %v382_v42  ;;  %v527_v42 = vld [vmem:[%s4053_s7 + $0x38] sm:$0xff] }
 0x1d3   :  { %v448_v47 = vmax.f32 %v383_v46, 0.0  ;;  %v531_v46 = vld [vmem:[%s4053_s7 + $0x58] sm:$0xff] }
 0x1d4   :  { %705 = vmatmul.f32.gmra.mxu2 %v549_v56  ;;  %649 = vmatmul.f32.gmra.mxu1 %v548_v55  ;;  %v848_v55 = vld [vmem:[%s4049_s3 + $0x60] sm:$0xff] }
 0x1d5   :  { %v497_v48 = vadd.f32 %v496_v44, %v448_v47  ;;  %v523_v44 = vld [vmem:[%s4053_s7 + $0x18] sm:$0xff] }
 0x1d8   :  { %v385_v53 = vpop.f32.mrf.mxu0 }
 0x1d9   :  { %v386_v58 = vadd.f32 %v2534_v33, %v385_v53 }
 0x1db   :  { %v449_v61 = vmax.f32 %v386_v58, 0.0  ;;  %v543_v58 = vld [vmem:[%s4053_s7 + $0xb8] sm:$0xff] }
 0x1dc   :  { %708 = vmatmul.f32.gmra.mxu2 %v553_v51  ;;  %652 = vmatmul.f32.gmra.mxu1 %v552_v7  ;;  %v846_v51 = vld [vmem:[%s4049_s3 + $0x50] sm:$0xff]  ;;  %v845_v7 = vld [vmem:[%s4049_s3 + $0x48] sm:$0xff] }
 0x1dd   :  { %v498_v1 = vadd.f32 %v497_v48, %v449_v61 }
 0x1e0   :  { %v388_v3 = vpop.f32.mrf.mxu0 }
 0x1e1   :  { %v389_v5 = vadd.f32 %v2534_v33, %v388_v3  ;;  %v3009_v3 = vpop.f32.mrf.mxu2 }
 0x1e3   :  { %v450_v6 = vmax.f32 %v389_v5, 0.0 }
 0x1e5   :  { %v499_v54 = vadd.f32 %v498_v1, %v450_v6 }
 0x1e8   :  { %v391_v59 = vpop.f32.mrf.mxu0 }
 0x1e9   :  { %v392_v50 = vadd.f32 %v2534_v33, %v391_v59  ;;  %v3024_v56 = vpop.f32.mrf.mxu2 }
 0x1eb   :  { %v451_v49 = vmax.f32 %v392_v50, 0.0  ;;  %v559_v50 = vld [vmem:[%s4053_s7 + $0x138] sm:$0xff] }
 0x1ed   :  { %v500_v41 = vadd.f32 %v499_v54, %v451_v49  ;;  %v850_v54 = vld [vmem:[%s4049_s3 + $0x70] sm:$0xff] }
 0x1ee   :  { %857 = vmatpush.msra.mxu2 %v850_v54  ;;  %1893 = vmatpush.msrb.mxu0 %v850_v54 }
 0x1f0   :  { %v394_v57 = vpop.f32.mrf.mxu0 }
 0x1f1   :  { %v395_v60 = vadd.f32 %v2534_v33, %v394_v57  ;;  %v3044_v57 = vpop.f32.mrf.mxu2 }
 0x1f3   :  { %v452_v4 = vmax.f32 %v395_v60, 0.0 }
 0x1f5   :  { %v501_v9 = vadd.f32 %v500_v41, %v452_v4  ;;  %v847_v41 = vld [vmem:[%s4049_s3 + $0x58] sm:$0xff] }
 0x1f8   :  { %v397_v11 = vpop.f32.mrf.mxu0 }
 0x1f9   :  { %v398_v12 = vadd.f32 %v2534_v33, %v397_v11  ;;  %v843_v11 = vld [vmem:[%s4049_s3 + $0x38] sm:$0xff] }
 0x1fb   :  { %v453_v13 = vmax.f32 %v398_v12, 0.0  ;;  %v842_v12 = vld [vmem:[%s4049_s3 + $0x30] sm:$0xff] }
 0x1fd   :  { %724 = vmatpush.msrb.mxu1 %v453_v13  ;;  %2317 = vmatpush.msra.mxu3 %v453_v13  ;;  %v502_v15 = vadd.f32 %v501_v9, %v453_v13  ;;  %v844_v9 = vld [vmem:[%s4049_s3 + $0x40] sm:$0xff]  ;;  %v3062_v13 = vpop.f32.mrf.mxu2 }
 0x1ff   :  { %725 = vmatpush.msrb.mxu1 %v452_v4  ;;  %2318 = vmatpush.msra.mxu3 %v452_v4  ;;  %v563_v4 = vld [vmem:[%s4053_s7 + $0x158] sm:$0xff] }
 0x200   :  { %v400_v16 = vpop.f32.mrf.mxu0 }
 0x201   :  { %v401_v17 = vadd.f32 %v2534_v33, %v400_v16  ;;  %726 = vmatpush.msrb.mxu1 %v451_v49  ;;  %2319 = vmatpush.msra.mxu3 %v451_v49  ;;  %v849_v49 = vld [vmem:[%s4049_s3 + $0x68] sm:$0xff]  ;;  %v567_v16 = vld [vmem:[%s4053_s7 + $0x178] sm:$0xff] }
 0x202   :  { %858 = vmatpush.msra.mxu2 %v849_v49  ;;  %1894 = vmatpush.msrb.mxu0 %v849_v49 }
 0x203   :  { %v454_v19 = vmax.f32 %v401_v17, 0.0  ;;  %727 = vmatpush.msrb.mxu1 %v450_v6  ;;  %2320 = vmatpush.msra.mxu3 %v450_v6  ;;  %v555_v6 = vld [vmem:[%s4053_s7 + $0x118] sm:$0xff]  ;;  %v841_v17 = vld [vmem:[%s4049_s3 + $0x28] sm:$0xff] }
 0x204   :  { %859 = vmatpush.msra.mxu2 %v848_v55  ;;  %1895 = vmatpush.msrb.mxu0 %v848_v55 }
 0x205   :  { %v503_v20 = vadd.f32 %v502_v15, %v454_v19  ;;  %728 = vmatpush.msrb.mxu1 %v449_v61  ;;  %2321 = vmatpush.msra.mxu3 %v449_v61 }
 0x206   :  { %860 = vmatpush.msra.mxu2 %v847_v41 }
 0x207   :  { %729 = vmatpush.msrb.mxu1 %v448_v47  ;;  %2322 = vmatpush.msra.mxu3 %v448_v47 }
 0x208   :  { %v403_v21 = vpop.f32.mrf.mxu0  ;;  %861 = vmatpush.msra.mxu2 %v846_v51 }
 0x209   :  { %v404_v22 = vadd.f32 %v2534_v33, %v403_v21  ;;  %730 = vmatpush.msrb.mxu1 %v2841_v40  ;;  %2323 = vmatpush.msra.mxu3 %v2841_v40  ;;  %v557_v33 = vld [vmem:[%s4053_s7 + $0x128] sm:$0xff]  ;;  %v554_v40 = vld [vmem:[%s4053_s7 + $0x110] sm:$0xff] }
 0x20a   :  { %711 = vmatmul.f32.gmra.mxu2 %v557_v33  ;;  %v838_v21 = vld [vmem:[%s4049_s3 + $0x10] sm:$0xff]  ;;  %v837_v33 = vld [vmem:[%s4049_s3 + $0x8] sm:$0xff] }
 0x20b   :  { %v455_v24 = vmax.f32 %v404_v22, 0.0  ;;  %731 = vmatpush.msrb.mxu1 %v2836_v34  ;;  %2324 = vmatpush.msra.mxu3 %v2836_v34  ;;  %v542_v34 = vld [vmem:[%s4053_s7 + $0xb0] sm:$0xff] }
 0x20c   :  { %862 = vmatpush.msra.mxu2 %v845_v7 }
 0x20d   :  { %v2889_v25 = vadd.f32 %v503_v20, %v455_v24  ;;  %732 = vmatpush.msrb.mxu1 %v2830_v30  ;;  %2325 = vmatpush.msra.mxu3 %v2830_v30  ;;  %v570_v30 = vld [vmem:[%s4053_s7 + $0x190] sm:$0xf]  ;;  %v839_v20 = vld [vmem:[%s4049_s3 + $0x18] sm:$0xff] }
 0x20e   :  { %863 = vmatpush.msra.mxu2 %v844_v9 }
 0x20f   :  { %733 = vmatpush.msrb.mxu1 %v2823_v26  ;;  %2326 = vmatpush.msra.mxu3 %v2823_v26  ;;  %v530_v26 = vld [vmem:[%s4053_s7 + $0x50] sm:$0xff] }
 0x210   :  { %864 = vmatpush.msra.mxu2 %v843_v11 }
 0x211   :  { %734 = vmatpush.msrb.mxu1 %v2819_v23  ;;  %2327 = vmatpush.msra.mxu3 %v2819_v23  ;;  %v565_v23 = vld [vmem:[%s4053_s7 + $0x168] sm:$0xff] }
 0x212   :  { %865 = vmatpush.msra.mxu2 %v842_v12 }
 0x213   :  { %735 = vmatpush.msrb.mxu1 %v2814_v18  ;;  %2328 = vmatpush.msra.mxu3 %v2814_v18  ;;  %v522_v18 = vld [vmem:[%s4053_s7 + $0x10] sm:$0xff] }
 0x214   :  { %866 = vmatpush.msra.mxu2 %v841_v17 }
 0x215   :  { %736 = vmatpush.msrb.mxu1 %v2807_v14  ;;  %2329 = vmatpush.msra.mxu3 %v2807_v14  ;;  %v558_v14 = vld [vmem:[%s4053_s7 + $0x130] sm:$0xff] }
 0x217   :  { %737 = vmatpush.msrb.mxu1 %v2800_v10  ;;  %2330 = vmatpush.msra.mxu3 %v2800_v10  ;;  %v561_v10 = vld [vmem:[%s4053_s7 + $0x148] sm:$0xff] }
 0x218   :  { %714 = vmatmul.f32.gmra.mxu2 %v561_v10 }
 0x219   :  { %738 = vmatpush.msrb.mxu1 %v2797_v8  ;;  %2331 = vmatpush.msra.mxu3 %v2797_v8  ;;  %v526_v8 = vld [vmem:[%s4053_s7 + $0x30] sm:$0xff]  ;;  %v2946_v32 = vpop.f32.mrf.mxu1 }
 0x21b   :  { %739 = vmatpush.msrb.mxu1 %v2794_v63  ;;  %2332 = vmatpush.msra.mxu3 %v2794_v63  ;;  %v562_v63 = vld [vmem:[%s4053_s7 + $0x150] sm:$0xff] }
 0x21c   :  { %740 = vmatmul.f32.vlgmr.msrb.gmra.mxu1 %v522_v18  ;;  %767 = vmatmul.f32.vlgmr.msra.gmra.mxu3 %v558_v14  ;;  %v836_v18 = vld [vmem:[%s4049_s3] sm:$0xff] }
 0x21d   :  { %794 = vmatpush.msra.mxu1 %v455_v24  ;;  %v571_v24 = vld [vmem:[%s4053_s7 + $0x198] sm:$0xf] }
 0x21f   :  { %795 = vmatpush.msra.mxu1 %v454_v19  ;;  %v840_v19 = vld [vmem:[%s4049_s3 + $0x20] sm:$0xff]  ;;  %v685_v14 = vpop.f32.mrf.mxu2 }
 0x220   :  { %717 = vmatmul.f32.gmra.mxu2 %v565_v23 }
 0x221   :  { %v2954_v36 = vpop.f32.mrf.mxu1  ;;  %867 = vmatpush.msra.mxu2 %v840_v19 }
 0x223   :  { %868 = vmatpush.msra.mxu2 %v839_v20 }
 0x224   :  { %743 = vmatmul.f32.gmra.mxu1 %v526_v8  ;;  %770 = vmatmul.f32.gmra.mxu3 %v562_v63 }
 0x225   :  { %869 = vmatpush.msra.mxu2 %v838_v21 }
 0x227   :  { %870 = vmatpush.msra.mxu2 %v837_v33  ;;  %v688_v8 = vpop.f32.mrf.mxu2 }
 0x228   :  { %720 = vmatmul.f32.gmra.mxu2 %v569_v28 }
 0x229   :  { %v2959_v39 = vpop.f32.mrf.mxu1  ;;  %871 = vmatpush.msra.mxu2 %v836_v18 }
 0x22c   :  { %746 = vmatmul.f32.gmra.mxu1 %v530_v26  ;;  %773 = vmatmul.f32.gmra.mxu3 %v566_v27  ;;  %v686_v27 = vadd.f32 %v685_v14, %v2946_v32 }
 0x22f   :  { %v691_v23 = vpop.f32.mrf.mxu2 }
 0x231   :  { %v2964_v43 = vpop.f32.mrf.mxu1 }
 0x234   :  { %749 = vmatmul.f32.gmra.mxu1 %v534_v29  ;;  %776 = vmatmul.f32.gmra.mxu3 %v570_v30 }
 0x237   :  { %v694_v29 = vpop.f32.mrf.mxu2 }
 0x239   :  { %v2970_v45 = vpop.f32.mrf.mxu1 }
 0x23c   :  { %752 = vmatmul.f32.gmra.mxu1 %v538_v31 }
 0x241   :  { %v2979_v47 = vpop.f32.mrf.mxu1 }
 0x244   :  { %755 = vmatmul.f32.gmra.mxu1 %v542_v34  ;;  %v689_v34 = vadd.f32 %v688_v8, %v2954_v36 }
 0x249   :  { %v2985_v48 = vpop.f32.mrf.mxu1 }
 0x24c   :  { %758 = vmatmul.f32.gmra.mxu1 %v546_v35 }
 0x251   :  { %v2992_v53 = vpop.f32.mrf.mxu1 }
 0x254   :  { %761 = vmatmul.f32.gmra.mxu1 %v550_v38 }
 0x259   :  { %v2998_v61 = vpop.f32.mrf.mxu1 }
 0x25c   :  { %764 = vmatmul.f32.gmra.mxu1 %v554_v40 }
 0x264   :  { %2165 = vmatmul.msk.f32.vlgmr.msra.gmra.mxu1 %vm572_vm1, %v523_v44  ;;  %v697_v44 = vpop.f32.mrf.mxu2 }
 0x265   :  { %v698_v36 = vadd.f32 %v697_v44, %v2970_v45 }
 0x26c   :  { %2166 = vmatmul.msk.f32.gmra.mxu1 %vm572_vm1, %v527_v42  ;;  %v692_v42 = vadd.f32 %v691_v23, %v2959_v39 }
 0x274   :  { %2167 = vmatmul.msk.f32.gmra.mxu1 %vm572_vm1, %v531_v46 }
 0x27c   :  { %2168 = vmatmul.msk.f32.gmra.mxu1 %vm572_vm1, %v535_v37 }
 0x284   :  { %2169 = vmatmul.msk.f32.gmra.mxu1 %vm572_vm1, %v539_v52  ;;  %v700_v52 = vpop.f32.mrf.mxu2 }
 0x285   :  { %v701_v39 = vadd.f32 %v700_v52, %v2979_v47 }
 0x28c   :  { %2170 = vmatmul.msk.f32.gmra.mxu1 %vm572_vm1, %v543_v58  ;;  %v695_v58 = vadd.f32 %v694_v29, %v2964_v43 }
 0x294   :  { %2171 = vmatmul.msk.f32.gmra.mxu1 %vm572_vm1, %v547_v0 }
 0x299   :  { %v3004_v1 = vpop.f32.mrf.mxu1 }
 0x29a   :  { %v742_v28 = vadd.f32 %v3004_v1, %v686_v27 }
 0x29c   :  { %2172 = vmatmul.msk.f32.gmra.mxu1 %vm572_vm1, %v551_v2 }
 0x2a1   :  { %v3012_v5 = vpop.f32.mrf.mxu1 }
 0x2a2   :  { %v745_v35 = vadd.f32 %v3012_v5, %v689_v34  ;;  %v703_v5 = vpop.f32.mrf.mxu2 }
 0x2a3   :  { %v704_v43 = vadd.f32 %v703_v5, %v2985_v48 }
 0x2a4   :  { %2173 = vmatmul.msk.f32.gmra.mxu1 %vm572_vm1, %v555_v6 }
 0x2a9   :  { %v3026_v59 = vpop.f32.mrf.mxu1 }
 0x2aa   :  { %v748_v46 = vadd.f32 %v3026_v59, %v692_v42 }
 0x2ac   :  { %2174 = vmatmul.msk.f32.gmra.mxu1 %vm572_vm1, %v559_v50  ;;  %v706_v50 = vpop.f32.mrf.mxu2 }
 0x2ad   :  { %v707_v45 = vadd.f32 %v706_v50, %v2992_v53 }
 0x2b1   :  { %v750_v60 = vpop.f32.mrf.mxu1 }
 0x2b2   :  { %v751_v0 = vadd.f32 %v750_v60, %v695_v58 }
 0x2b4   :  { %2175 = vmatmul.msk.f32.gmra.mxu1 %vm572_vm1, %v563_v4  ;;  %v709_v4 = vpop.f32.mrf.mxu2 }
 0x2b5   :  { %v710_v47 = vadd.f32 %v709_v4, %v2998_v61 }
 0x2b9   :  { %v753_v15 = vpop.f32.mrf.mxu1 }
 0x2ba   :  { %v754_v6 = vadd.f32 %v753_v15, %v698_v36  ;;  %v768_v15 = vpop.f32.mrf.mxu3 }
 0x2bc   :  { %2176 = vmatmul.msk.f32.gmra.mxu1 %vm572_vm1, %v567_v16  ;;  %v712_v12 = vpop.f32.mrf.mxu2 }
 0x2bd   :  { %v713_v48 = vadd.f32 %v712_v12, %v3009_v3 }
 0x2bf   :  { %v769_v21 = vadd.f32 %v768_v15, %v713_v48 }
 0x2c1   :  { %v756_v22 = vpop.f32.mrf.mxu1 }
 0x2c2   :  { %v757_v59 = vadd.f32 %v756_v22, %v701_v39  ;;  %v771_v22 = vpop.f32.mrf.mxu3 }
 0x2c4   :  { %2177 = vmatmul.msk.f32.gmra.mxu1 %vm572_vm1, %v571_v24  ;;  %v715_v20 = vpop.f32.mrf.mxu2 }
 0x2c5   :  { %v716_v53 = vadd.f32 %v715_v20, %v3024_v56 }
 0x2c7   :  { %v772_v14 = vadd.f32 %v771_v22, %v716_v53  ;;  %v2377_v22 = vmov 400.0  }
 0x2c8   :  { %2345 = vrcp.f32 %v2377_v22  ;;  %v2184_v22 = vld [vmem:[%s4046_s0 + $0x198] sm:$0xff] }
 0x2c9   :  { %v759_v10 = vpop.f32.mrf.mxu1 }
 0x2ca   :  { %v760_v41 = vadd.f32 %v759_v10, %v704_v43  ;;  %v774_v61 = vpop.f32.mrf.mxu3 }
 0x2cc   :  { %v718_v18 = vpop.f32.mrf.mxu2 }
 0x2d1   :  { %v762_v63 = vpop.f32.mrf.mxu1 }
 0x2d2   :  { %v763_v7 = vadd.f32 %v762_v63, %v707_v45  ;;  %v719_v63 = vadd.f32 %v718_v18, %v3044_v57  ;;  %v777_v29 = vpop.f32.mrf.mxu3  ;;  %v2340_v57 = vld [vmem:[%s4050_s4] ss:$0 sm:$0xff] }
 0x2d4   :  { %v775_v23 = vadd.f32 %v774_v61, %v719_v63 }
 0x2d9   :  { %v765_v26 = vpop.f32.mrf.mxu1 }
 0x2da   :  { %v766_v16 = vadd.f32 %v765_v26, %v710_v47  ;;  %v721_v26 = vpop.f32.mrf.mxu2 }
 0x2e1   :  { %v797_v30 = vpop.f32.mrf.mxu1 }
 0x2e2   :  { %v798_v31 = vadd.f32 %v797_v30, %v742_v28  ;;  %v722_v28 = vadd.f32 %v721_v26, %v3062_v13 }
 0x2e4   :  { %872 = vmatmul.f32.vlgmr.msra.gmra.mxu2 %v798_v31  ;;  %v778_v30 = vadd.f32 %v777_v29, %v722_v28 }
 0x2e9   :  { %v800_v38 = vpop.f32.mrf.mxu1 }
 0x2ea   :  { %v801_v40 = vadd.f32 %v800_v38, %v745_v35 }
 0x2ec   :  { %875 = vmatmul.f32.gmra.mxu2 %v801_v40 }
 0x2f1   :  { %v803_v37 = vpop.f32.mrf.mxu1 }
 0x2f2   :  { %v804_v32 = vadd.f32 %v803_v37, %v748_v46 }
 0x2f4   :  { %878 = vmatmul.f32.gmra.mxu2 %v804_v32 }
 0x2f9   :  { %v806_v1 = vpop.f32.mrf.mxu1 }
 0x2fa   :  { %v807_v2 = vadd.f32 %v806_v1, %v751_v0 }
 0x2fc   :  { %881 = vmatmul.f32.gmra.mxu2 %v807_v2 }
 0x301   :  { %v809_v62 = vpop.f32.mrf.mxu1 }
 0x302   :  { %v810_v54 = vadd.f32 %v809_v62, %v754_v6 }
 0x304   :  { %884 = vmatmul.f32.gmra.mxu2 %v810_v54 }
 0x309   :  { %v812_v49 = vpop.f32.mrf.mxu1 }
 0x30a   :  { %v813_v55 = vadd.f32 %v812_v49, %v757_v59 }
 0x30c   :  { %887 = vmatmul.f32.gmra.mxu2 %v813_v55 }
 0x311   :  { %v815_v51 = vpop.f32.mrf.mxu1 }
 0x312   :  { %v816_v60 = vadd.f32 %v815_v51, %v760_v41 }
 0x314   :  { %890 = vmatmul.f32.gmra.mxu2 %v816_v60 }
 0x319   :  { %v818_v9 = vpop.f32.mrf.mxu1 }
 0x31a   :  { %v819_v11 = vadd.f32 %v818_v9, %v763_v7 }
 0x31c   :  { %893 = vmatmul.f32.gmra.mxu2 %v819_v11 }
 0x321   :  { %v821_v17 = vpop.f32.mrf.mxu1 }
 0x322   :  { %v822_v19 = vadd.f32 %v821_v17, %v766_v16 }
 0x324   :  { %896 = vmatmul.f32.gmra.mxu2 %v822_v19 }
 0x329   :  { %v824_v24 = vpop.f32.mrf.mxu1 }
 0x32a   :  { %v825_v33 = vadd.f32 %v824_v24, %v769_v21 }
 0x32c   :  { %899 = vmatmul.f32.gmra.mxu2 %v825_v33  ;;  %v2378_v33 = vmov 100.0  }
 0x32d   :  { %2347 = vrcp.f32 %v2378_v33  ;;  %v2186_v33 = vld [vmem:[%s4046_s0 + $0x1a8] sm:$0xff] }
 0x331   :  { %v827_v10 = vpop.f32.mrf.mxu1 }
 0x332   :  { %v828_v8 = vadd.f32 %v827_v10, %v772_v14  ;;  %v505_v14 = vrot.slane %v2889_v25, 4  ;;  %v2346_v10 = vpop.eup %2345 }
 0x333   :  { %v2348_v61 = vpop.eup %2347  ;;  %v512_v26 = vmul.f32 400.0, %v2346_v10  ;;  %vm516_vm3 = vweird.f32 %v2346_v10 }
 0x334   :  { %902 = vmatmul.f32.gmra.mxu2 %v828_v8  ;;  %v506_v63 = vadd.f32 %v505_v14, %v2889_v25  ;;  %vm950_vm4 = vweird.f32 %v2348_v61  ;;  %v2189_v14 = vld [vmem:[%s4046_s0 + $0x1c0] sm:$0xff] }
 0x336   :  { %v507_v29 = vrot.slane %v506_v63, 2 }
 0x339   :  { %v830_v3 = vpop.f32.mrf.mxu1 }
 0x33a   :  { %v831_v27 = vadd.f32 %v830_v3, %v775_v23 }
 0x33c   :  { %905 = vmatmul.f32.gmra.mxu2 %v831_v27  ;;  %v946_v27 = vmul.f32 100.0, %v2348_v61 }
 0x341   :  { %v833_v31 = vpop.f32.mrf.mxu1 }
 0x342   :  { %v834_v56 = vadd.f32 %v833_v31, %v778_v30  ;;  %v513_v30 = vsub.f32 1.0, %v512_v26  ;;  %v2195_v26 = vld [vmem:[%s4046_s0 + $0x1f0] sm:$0xff] }
 0x344   :  { %908 = vmatmul.f32.gmra.mxu2 %v834_v56  ;;  %v947_v56 = vsub.f32 1.0, %v946_v27  ;;  %v2196_v27 = vld [vmem:[%s4046_s0 + $0x1f8] sm:$0xff] }
 0x346   :  { %v948_v25 = vmul.f32 %v2348_v61, %v947_v56  ;;  %v2379_v56 = vmov 25.0  }
 0x347   :  { %2349 = vrcp.f32 %v2379_v56 }
 0x367   :  { %v873_v34 = vpop.f32.mrf.mxu2 }
 0x368   :  { %v3111_v37 = vadd.f32 %v2340_v57, %v873_v34 }
 0x36a   :  { %v912_v1 = vmax.f32 %v3111_v37, 0.0  ;;  %v955_v37 = vld [vmem:[%s4054_s8 + $0x8] sm:$0xff] }
 0x36f   :  { %v876_v35 = vpop.f32.mrf.mxu2 }
 0x370   :  { %v3109_v46 = vadd.f32 %v2340_v57, %v876_v35  ;;  %v508_v35 = vadd.f32 %v507_v29, %v506_v63  ;;  %v2193_v63 = vld [vmem:[%s4046_s0 + $0x1e0] sm:$0xff] }
 0x371   :  { %v2197_v29 = vld [vmem:[%s4046_s0 + $0x200] sm:$0xff] }
 0x372   :  { %v913_v52 = vmax.f32 %v3109_v46, 0.0  ;;  %v1016_v46 = vld [vmem:[%s4051_s5 + $0x68] sm:$0xff] }
 0x374   :  { %v925_v6 = vadd.f32 %v913_v52, %v912_v1 }
 0x377   :  { %v879_v38 = vpop.f32.mrf.mxu2 }
 0x378   :  { %v3113_v13 = vadd.f32 %v2340_v57, %v879_v38 }
 0x37a   :  { %v914_v0 = vmax.f32 %v3113_v13, 0.0  ;;  %v1017_v13 = vld [vmem:[%s4051_s5 + $0x70] sm:$0xff] }
 0x37c   :  { %v926_v39 = vadd.f32 %v925_v6, %v914_v0  ;;  %v949_v6 = vadd.f32 %v2348_v61, %v948_v25  ;;  %v2350_v25 = vpop.eup %2349 }
 0x37d   :  { %vm1072_vm7 = vweird.f32 %v2350_v25 }
 0x37f   :  { %v882_v40 = vpop.f32.mrf.mxu2 }
 0x380   :  { %v3115_v32 = vadd.f32 %v2340_v57, %v882_v40  ;;  %v514_v40 = vmul.f32 %v2346_v10, %v513_v30  ;;  %v2341_v30 = vld [vmem:[%s4052_s6] ss:$0 sm:$0xff] }
 0x382   :  { %v915_v5 = vmax.f32 %v3115_v32, 0.0  ;;  %v1015_v32 = vld [vmem:[%s4051_s5 + $0x60] sm:$0xff] }
 0x384   :  { %v927_v50 = vadd.f32 %v926_v39, %v915_v5 }
 0x387   :  { %v885_v44 = vpop.f32.mrf.mxu2 }
 0x388   :  { %v3118_v58 = vadd.f32 %v2340_v57, %v885_v44 }
 0x38a   :  { %v916_v54 = vmax.f32 %v3118_v58, 0.0  ;;  %v1018_v58 = vld [vmem:[%s4051_s5 + $0x78] sm:$0xff] }
 0x38c   :  { %v928_v55 = vadd.f32 %v927_v50, %v916_v54 }
 0x38f   :  { %v888_v42 = vpop.f32.mrf.mxu2 }
 0x390   :  { %v3122_v36 = vadd.f32 %v2340_v57, %v888_v42 }
 0x392   :  { %v917_v59 = vmax.f32 %v3122_v36, 0.0  ;;  %v954_v36 = vld [vmem:[%s4054_s8] sm:$0xff] }
 0x394   :  { %v929_v51 = vadd.f32 %v928_v55, %v917_v59 }
 0x397   :  { %v891_v2 = vpop.f32.mrf.mxu2 }
 0x398   :  { %v3129_v62 = vadd.f32 %v2340_v57, %v891_v2  ;;  %v515_v2 = vadd.f32 %v2346_v10, %v514_v40 }
 0x39a   :  { %v918_v49 = vmax.f32 %v3129_v62, 0.0  ;;  %v956_v62 = vld [vmem:[%s4054_s8 + $0x10] sm:$0xff] }
 0x39c   :  { %v930_v4 = vadd.f32 %v929_v51, %v918_v49 }
 0x39f   :  { %v894_v43 = vpop.f32.mrf.mxu2 }
 0x3a0   :  { %v895_v41 = vadd.f32 %v2340_v57, %v894_v43  ;;  %v3148_v43 = vsel %vm516_vm3, %v2346_v10, %v515_v2  ;;  %v2190_v10 = vld [vmem:[%s4046_s0 + $0x1c8] sm:$0xff] }
 0x3a2   :  { %v919_v60 = vmax.f32 %v895_v41, 0.0  ;;  %v3152_v41 = vsel %vm950_vm4, %v2348_v61, %v949_v6  ;;  %v2192_v61 = vld [vmem:[%s4046_s0 + $0x1d8] sm:$0xff] }
 0x3a4   :  { %v931_v45 = vadd.f32 %v930_v4, %v919_v60 }
 0x3a7   :  { %v897_v7 = vpop.f32.mrf.mxu2 }
 0x3a8   :  { %v898_v9 = vadd.f32 %v2340_v57, %v897_v7  ;;  %v1007_v7 = vld [vmem:[%s4051_s5 + $0x20] sm:$0xff] }
 0x3aa   :  { %v920_v11 = vmax.f32 %v898_v9, 0.0  ;;  %v957_v9 = vld [vmem:[%s4054_s8 + $0x18] sm:$0x1] }
 0x3ac   :  { %v932_v12 = vadd.f32 %v931_v45, %v920_v11 }
 0x3af   :  { %v900_v47 = vpop.f32.mrf.mxu2 }
 0x3b0   :  { %v901_v15 = vadd.f32 %v2340_v57, %v900_v47  ;;  %v1004_v47 = vld [vmem:[%s4051_s5 + $0x8] sm:$0xff] }
 0x3b2   :  { %v921_v16 = vmax.f32 %v901_v15, 0.0  ;;  %v1003_v15 = vld [vmem:[%s4051_s5] sm:$0xff] }
 0x3b4   :  { %v933_v17 = vadd.f32 %v932_v12, %v921_v16  ;;  %v1005_v12 = vld [vmem:[%s4051_s5 + $0x10] sm:$0xff] }
 0x3b7   :  { %v903_v19 = vpop.f32.mrf.mxu2 }
 0x3b8   :  { %v904_v48 = vadd.f32 %v2340_v57, %v903_v19 }
 0x3ba   :  { %v922_v20 = vmax.f32 %v904_v48, 0.0 }
 0x3bc   :  { %v934_v21 = vadd.f32 %v933_v17, %v922_v20 }
 0x3bf   :  { %v906_v24 = vpop.f32.mrf.mxu2 }
 0x3c0   :  { %v907_v53 = vadd.f32 %v2340_v57, %v906_v24  ;;  %v2185_v24 = vld [vmem:[%s4046_s0 + $0x1a0] sm:$0xff] }
 0x3c2   :  { %v923_v18 = vmax.f32 %v907_v53, 0.0  ;;  %v2187_v53 = vld [vmem:[%s4046_s0 + $0x1b0] sm:$0xff] }
 0x3c4   :  { %v935_v8 = vadd.f32 %v934_v21, %v923_v18  ;;  %v2183_v21 = vld [vmem:[%s4046_s0 + $0x190] sm:$0xff] }
 0x3c7   :  { %v909_v23 = vpop.f32.mrf.mxu2 }
 0x3c8   :  { %v910_v3 = vadd.f32 %v2340_v57, %v909_v23  ;;  %v509_v57 = vrot.slane %v508_v35, 1  ;;  %v2194_v23 = vld [vmem:[%s4046_s0 + $0x1e8] sm:$0xff] }
 0x3ca   :  { %v924_v28 = vmax.f32 %v910_v3, 0.0  ;;  %v510_v50 = vadd.f32 %v509_v57, %v508_v35  ;;  %v2198_v35 = vld [vmem:[%s4046_s0 + $0x208] sm:$0xff] }
 0x3cc   :  { %v937_v31 = vsel %vm936_vm2, %v924_v28, 0.0  ;;  %2178 = vmatpush.msk.msrb.mxu3 %vm936_vm2, %v924_v28  ;;  %v518_v4 = vmul.f32 %v3148_v43, %v510_v50 }
 0x3cd   :  { %v938_v34 = vadd.f32 %v937_v31, %v935_v8  ;;  %v2191_v8 = vld [vmem:[%s4046_s0 + $0x1d0] sm:$0xff] }
 0x3ce   :  { %978 = vmatpush.msrb.mxu3 %v923_v18  ;;  %v2188_v18 = vld [vmem:[%s4046_s0 + $0x1b8] sm:$0xff] }
 0x3cf   :  { %v939_v38 = vrot.slane %v938_v34, 4 }
 0x3d0   :  { %979 = vmatpush.msrb.mxu3 %v922_v20 }
 0x3d1   :  { %v940_v44 = vadd.f32 %v939_v38, %v938_v34 }
 0x3d2   :  { %980 = vmatpush.msrb.mxu3 %v921_v16  ;;  %v1128_v16 = vld [vmem:[%s4047_s1] sm:$0xff] }
 0x3d3   :  { %v941_v42 = vrot.slane %v940_v44, 2 }
 0x3d4   :  { %981 = vmatpush.msrb.mxu3 %v920_v11  ;;  %v1006_v11 = vld [vmem:[%s4051_s5 + $0x18] sm:$0xff] }
 0x3d5   :  { %v942_v39 = vadd.f32 %v941_v42, %v940_v44 }
 0x3d6   :  { %982 = vmatpush.msrb.mxu3 %v919_v60 }
 0x3d7   :  { %v943_v55 = vrot.slane %v942_v39, 1 }
 0x3d8   :  { %983 = vmatpush.msrb.mxu3 %v918_v49  ;;  %v1008_v49 = vld [vmem:[%s4051_s5 + $0x28] sm:$0xff] }
 0x3d9   :  { %v944_v51 = vadd.f32 %v943_v55, %v942_v39  ;;  %v1068_v39 = vmul.f32 25.0, %v2350_v25  ;;  %v2199_v55 = vld [vmem:[%s4046_s0 + $0x210] sm:$0xff] }
 0x3da   :  { %984 = vmatpush.msrb.mxu3 %v917_v59  ;;  %v1009_v59 = vld [vmem:[%s4051_s5 + $0x30] sm:$0xff] }
 0x3db   :  { %v952_v45 = vmul.f32 %v3152_v41, %v944_v51 }
 0x3dc   :  { %985 = vmatpush.msrb.mxu3 %v916_v54  ;;  %v1010_v54 = vld [vmem:[%s4051_s5 + $0x38] sm:$0xff] }
 0x3dd   :  { %v3160_v60 = vadd.f32 %v952_v45, %v518_v4 }
 0x3de   :  { %986 = vmatpush.msrb.mxu3 %v915_v5  ;;  %v1011_v5 = vld [vmem:[%s4051_s5 + $0x40] sm:$0xff] }
 0x3e0   :  { %987 = vmatpush.msrb.mxu3 %v914_v0  ;;  %v1013_v0 = vld [vmem:[%s4051_s5 + $0x50] sm:$0xff] }
 0x3e2   :  { %988 = vmatpush.msrb.mxu3 %v913_v52  ;;  %v1014_v52 = vld [vmem:[%s4051_s5 + $0x58] sm:$0xff] }
 0x3e4   :  { %989 = vmatpush.msrb.mxu3 %v912_v1  ;;  %v1012_v1 = vld [vmem:[%s4051_s5 + $0x48] sm:$0xff] }
 0x3e5   :  { %2179 = vmatmul.msk.f32.vlgmr.msrb.gmra.mxu3 %vm958_vm5, %v954_v36  ;;  %v1069_v36 = vsub.f32 1.0, %v1068_v39 }
 0x3e6   :  { %1023 = vmatpush.msra.mxu3 %v1018_v58 }
 0x3e8   :  { %1024 = vmatpush.msra.mxu3 %v1017_v13 }
 0x3ea   :  { %1025 = vmatpush.msra.mxu3 %v1016_v46 }
 0x3ec   :  { %1026 = vmatpush.msra.mxu3 %v1015_v32  ;;  %v1070_v32 = vmul.f32 %v2350_v25, %v1069_v36 }
 0x3ed   :  { %2180 = vmatmul.msk.f32.gmra.mxu3 %vm958_vm5, %v955_v37  ;;  %v2200_v37 = vld [vmem:[%s4046_s0 + $0x218] sm:$0xff] }
 0x3ee   :  { %1027 = vmatpush.msra.mxu3 %v1014_v52 }
 0x3f0   :  { %1028 = vmatpush.msra.mxu3 %v1013_v0 }
 0x3f2   :  { %1029 = vmatpush.msra.mxu3 %v1012_v1  ;;  %v1071_v1 = vadd.f32 %v2350_v25, %v1070_v32 }
 0x3f4   :  { %1030 = vmatpush.msra.mxu3 %v1011_v5 }
 0x3f5   :  { %2181 = vmatmul.msk.f32.gmra.mxu3 %vm958_vm5, %v956_v62 }
 0x3f6   :  { %1031 = vmatpush.msra.mxu3 %v1010_v54 }
 0x3f8   :  { %1032 = vmatpush.msra.mxu3 %v1009_v59  ;;  %v3313_v59 = vsel %vm1072_vm7, %v2350_v25, %v1071_v1  ;;  %v2211_v1 = vld [vmem:[%s4046_s0 + $0x270] sm:$0xff] }
 0x3fa   :  { %1033 = vmatpush.msra.mxu3 %v1008_v49  ;;  %v2201_v49 = vld [vmem:[%s4046_s0 + $0x220] sm:$0xff] }
 0x3fc   :  { %1034 = vmatpush.msra.mxu3 %v1007_v7 }
 0x3fd   :  { %2182 = vmatmul.msk.f32.gmra.mxu3 %vm958_vm5, %v957_v9 }
 0x3fe   :  { %1035 = vmatpush.msra.mxu3 %v1006_v11 }
 0x400   :  { %1036 = vmatpush.msra.mxu3 %v1005_v12 }
 0x402   :  { %1037 = vmatpush.msra.mxu3 %v1004_v47  ;;  %v2202_v47 = vld [vmem:[%s4046_s0 + $0x228] sm:$0xff] }
 0x404   :  { %1038 = vmatpush.msra.mxu3 %v1003_v15 }
 0x406   :  { %1298 = vmatpush.msrb.mxu3 %v1128_v16  ;;  %v2203_v16 = vld [vmem:[%s4046_s0 + $0x230] sm:$0xff] }
 0x468   :  { %v991_v17 = vpop.f32.mrf.mxu3 }
 0x469   :  { %1039 = vmatmul.f32.vlgmr.msra.gmra.mxu3 %v991_v17 }
 0x470   :  { %v994_v19 = vpop.f32.mrf.mxu3 }
 0x471   :  { %1042 = vmatmul.f32.gmra.mxu3 %v994_v19 }
 0x478   :  { %v997_v48 = vpop.f32.mrf.mxu3 }
 0x479   :  { %1045 = vmatmul.f32.gmra.mxu3 %v997_v48  ;;  %v2205_v48 = vld [vmem:[%s4046_s0 + $0x240] sm:$0xff] }
 0x480   :  { %v1000_v20 = vpop.f32.mrf.mxu3 }
 0x481   :  { %1048 = vmatmul.f32.gmra.mxu3 %v1000_v20 }
 0x489   :  { %2233 = vmatmul.msk.f32.vlgmr.msrb.gmra.mxu3 %vm88_vm0, %v2183_v21  ;;  %v2206_v21 = vld [vmem:[%s4046_s0 + $0x248] sm:$0xff] }
 0x491   :  { %2234 = vmatmul.msk.f32.gmra.mxu3 %vm88_vm0, %v2184_v22 }
 0x499   :  { %2235 = vmatmul.msk.f32.gmra.mxu3 %vm88_vm0, %v2185_v24  ;;  %v3344_v24 = vld [vmem:[%s4048_s2] ss:$0 sm:$0xff] }
 0x4a1   :  { %2236 = vmatmul.msk.f32.gmra.mxu3 %vm88_vm0, %v2186_v33  ;;  %v2207_v33 = vld [vmem:[%s4046_s0 + $0x250] sm:$0xff] }
 0x4a9   :  { %2237 = vmatmul.msk.f32.gmra.mxu3 %vm88_vm0, %v2187_v53 }
 0x4b1   :  { %2238 = vmatmul.msk.f32.gmra.mxu3 %vm88_vm0, %v2188_v18 }
 0x4b9   :  { %2239 = vmatmul.msk.f32.gmra.mxu3 %vm88_vm0, %v2189_v14 }
 0x4c1   :  { %2240 = vmatmul.msk.f32.gmra.mxu3 %vm88_vm0, %v2190_v10 }
 0x4c9   :  { %2241 = vmatmul.msk.f32.gmra.mxu3 %vm88_vm0, %v2191_v8 }
 0x4d1   :  { %2242 = vmatmul.msk.f32.gmra.mxu3 %vm88_vm0, %v2192_v61 }
 0x4d9   :  { %2243 = vmatmul.msk.f32.gmra.mxu3 %vm88_vm0, %v2193_v63 }
 0x4e1   :  { %2244 = vmatmul.msk.f32.gmra.mxu3 %vm88_vm0, %v2194_v23 }
 0x4e9   :  { %2245 = vmatmul.msk.f32.gmra.mxu3 %vm88_vm0, %v2195_v26 }
 0x4ec   :  { %v1040_v3 = vpop.f32.mrf.mxu3 }
 0x4ed   :  { %v1041_v38 = vadd.f32 %v2341_v30, %v1040_v3  ;;  %v2208_v3 = vld [vmem:[%s4046_s0 + $0x258] sm:$0xff] }
 0x4ef   :  { %v1052_v57 = vmax.f32 %v1041_v38, 0.0 }
 0x4f1   :  { %2246 = vmatmul.msk.f32.gmra.mxu3 %vm88_vm0, %v2196_v27 }
 0x4f4   :  { %v1043_v28 = vpop.f32.mrf.mxu3 }
 0x4f5   :  { %v1044_v34 = vadd.f32 %v2341_v30, %v1043_v28 }
 0x4f7   :  { %v1053_v44 = vmax.f32 %v1044_v34, 0.0 }
 0x4f9   :  { %2247 = vmatmul.msk.f32.gmra.mxu3 %vm88_vm0, %v2197_v29  ;;  %v1056_v50 = vadd.f32 %v1053_v44, %v1052_v57 }
 0x4fc   :  { %v1046_v31 = vpop.f32.mrf.mxu3 }
 0x4fd   :  { %v1047_v40 = vadd.f32 %v2341_v30, %v1046_v31 }
 0x4ff   :  { %v1054_v42 = vmax.f32 %v1047_v40, 0.0 }
 0x501   :  { %2248 = vmatmul.msk.f32.gmra.mxu3 %vm88_vm0, %v2198_v35  ;;  %v1057_v4 = vadd.f32 %v1056_v50, %v1054_v42  ;;  %v2209_v42 = vld [vmem:[%s4046_s0 + $0x260] sm:$0xff] }
 0x504   :  { %v1049_v2 = vpop.f32.mrf.mxu3 }
 0x505   :  { %v1050_v6 = vadd.f32 %v2341_v30, %v1049_v2 }
 0x507   :  { %v1055_v51 = vmax.f32 %v1050_v6, 0.0 }
 0x509   :  { %2249 = vmatmul.msk.f32.gmra.mxu3 %vm88_vm0, %v2199_v55  ;;  %v1059_v45 = vsel %vm1058_vm6, %v1055_v51, 0.0 }
 0x50a   :  { %v1060_v58 = vadd.f32 %v1059_v45, %v1057_v4 }
 0x50c   :  { %v1300_v13 = vpop.f32.mrf.mxu3  ;;  %v1061_v46 = vrot.slane %v1060_v58, 4 }
 0x50d   :  { %v3353_v18 = vadd.f32 %v3344_v24, %v1300_v13  ;;  %v2210_v13 = vld [vmem:[%s4046_s0 + $0x268] sm:$0xff] }
 0x50e   :  { %v1062_v52 = vadd.f32 %v1061_v46, %v1060_v58 }
 0x50f   :  { %v1450_v63 = vmax.f32 %v3353_v18, 0.0  ;;  %v2222_v18 = vld [vmem:[%s4046_s0 + $0x2c8] sm:$0xff] }
 0x510   :  { %v1063_v0 = vrot.slane %v1062_v52, 2 }
 0x511   :  { %2250 = vmatmul.msk.f32.gmra.mxu3 %vm88_vm0, %v2200_v37 }
 0x512   :  { %v1064_v5 = vadd.f32 %v1063_v0, %v1062_v52 }
 0x514   :  { %v1303_v62 = vpop.f32.mrf.mxu3  ;;  %v1065_v54 = vrot.slane %v1064_v5, 1 }
 0x515   :  { %v3350_v53 = vadd.f32 %v3344_v24, %v1303_v62 }
 0x516   :  { %v1066_v7 = vadd.f32 %v1065_v54, %v1064_v5 }
 0x517   :  { %v1451_v10 = vmax.f32 %v3350_v53, 0.0  ;;  %v2221_v53 = vld [vmem:[%s4046_s0 + $0x2c0] sm:$0xff] }
 0x518   :  { %v1074_v9 = vmul.f32 %v3313_v59, %v1066_v7  ;;  %v2212_v7 = vld [vmem:[%s4046_s0 + $0x278] sm:$0xff] }
 0x519   :  { %2251 = vmatmul.msk.f32.gmra.mxu3 %vm88_vm0, %v2201_v49  ;;  %v1500_v27 = vadd.f32 %v1451_v10, %v1450_v63 }
 0x51a   :  { %v1075_v11 = vadd.f32 %v1074_v9, %v3160_v60  ;;  %v2204_v60 = vld [vmem:[%s4046_s0 + $0x238] sm:$0xff] }
 0x51c   :  { %v1306_v12 = vpop.f32.mrf.mxu3  ;;  %1076 = vst [vmem:[#allocation2] sm:$0x1] %v1075_v11 }
 0x51d   :  { %v3356_v14 = vadd.f32 %v3344_v24, %v1306_v12 }
 0x51f   :  { %v1452_v23 = vmax.f32 %v3356_v14, 0.0 }
 0x521   :  { %2252 = vmatmul.msk.f32.gmra.mxu3 %vm88_vm0, %v2202_v47  ;;  %v1501_v30 = vadd.f32 %v1500_v27, %v1452_v23 }
 0x524   :  { %v1309_v15 = vpop.f32.mrf.mxu3 }
 0x525   :  { %v3361_v8 = vadd.f32 %v3344_v24, %v1309_v15  ;;  %v2213_v15 = vld [vmem:[%s4046_s0 + $0x280] sm:$0xff] }
 0x527   :  { %v1453_v28 = vmax.f32 %v3361_v8, 0.0  ;;  %v2220_v8 = vld [vmem:[%s4046_s0 + $0x2b8] sm:$0xff] }
 0x529   :  { %2253 = vmatmul.msk.f32.gmra.mxu3 %vm88_vm0, %v2203_v16  ;;  %v1502_v34 = vadd.f32 %v1501_v30, %v1453_v28 }
 0x52c   :  { %v1312_v17 = vpop.f32.mrf.mxu3 }
 0x52d   :  { %v3366_v26 = vadd.f32 %v3344_v24, %v1312_v17 }
 0x52f   :  { %v1454_v31 = vmax.f32 %v3366_v26, 0.0 }
 0x531   :  { %2254 = vmatmul.msk.f32.gmra.mxu3 %vm88_vm0, %v2204_v60  ;;  %v1503_v25 = vadd.f32 %v1502_v34, %v1454_v31  ;;  %v2216_v34 = vld [vmem:[%s4046_s0 + $0x298] sm:$0xff] }
 0x534   :  { %v1315_v19 = vpop.f32.mrf.mxu3 }
 0x535   :  { %v3377_v29 = vadd.f32 %v3344_v24, %v1315_v19 }
 0x537   :  { %v1455_v35 = vmax.f32 %v3377_v29, 0.0  ;;  %v2219_v29 = vld [vmem:[%s4046_s0 + $0x2b0] sm:$0xff] }
 0x539   :  { %2255 = vmatmul.msk.f32.gmra.mxu3 %vm88_vm0, %v2205_v48  ;;  %v1504_v2 = vadd.f32 %v1503_v25, %v1455_v35  ;;  %v2214_v48 = vld [vmem:[%s4046_s0 + $0x288] sm:$0xff] }
 0x53c   :  { %v1318_v20 = vpop.f32.mrf.mxu3 }
 0x53d   :  { %v3383_v56 = vadd.f32 %v3344_v24, %v1318_v20 }
 0x53f   :  { %v1456_v44 = vmax.f32 %v3383_v56, 0.0 }
 0x541   :  { %2256 = vmatmul.msk.f32.gmra.mxu3 %vm88_vm0, %v2206_v21  ;;  %v1505_v50 = vadd.f32 %v1504_v2, %v1456_v44  ;;  %v2223_v2 = vld [vmem:[%s4046_s0 + $0x2d0] sm:$0xff] }
 0x544   :  { %v1321_v22 = vpop.f32.mrf.mxu3 }
 0x545   :  { %v3390_v38 = vadd.f32 %v3344_v24, %v1321_v22 }
 0x547   :  { %v1457_v6 = vmax.f32 %v3390_v38, 0.0 }
 0x549   :  { %2257 = vmatmul.msk.f32.gmra.mxu3 %vm88_vm0, %v2207_v33  ;;  %v1506_v51 = vadd.f32 %v1505_v50, %v1457_v6 }
 0x54c   :  { %v1324_v61 = vpop.f32.mrf.mxu3 }
 0x54d   :  { %v1325_v57 = vadd.f32 %v3344_v24, %v1324_v61  ;;  %v2215_v61 = vld [vmem:[%s4046_s0 + $0x290] sm:$0xff] }
 0x54f   :  { %v1458_v55 = vmax.f32 %v1325_v57, 0.0  ;;  %v2218_v57 = vld [vmem:[%s4046_s0 + $0x2a8] sm:$0xff] }
 0x551   :  { %2258 = vmatmul.msk.f32.gmra.mxu3 %vm88_vm0, %v2208_v3  ;;  %v1507_v36 = vadd.f32 %v1506_v51, %v1458_v55 }
 0x554   :  { %v1327_v40 = vpop.f32.mrf.mxu3 }
 0x555   :  { %v1328_v39 = vadd.f32 %v3344_v24, %v1327_v40  ;;  %v2217_v40 = vld [vmem:[%s4046_s0 + $0x2a0] sm:$0xff] }
 0x557   :  { %v1459_v4 = vmax.f32 %v1328_v39, 0.0 }
 0x559   :  { %2259 = vmatmul.msk.f32.gmra.mxu3 %vm88_vm0, %v2209_v42  ;;  %v1508_v46 = vadd.f32 %v1507_v36, %v1459_v4 }
 0x55c   :  { %v1330_v45 = vpop.f32.mrf.mxu3 }
 0x55d   :  { %v1331_v58 = vadd.f32 %v3344_v24, %v1330_v45 }
 0x55f   :  { %v1460_v32 = vmax.f32 %v1331_v58, 0.0 }
 0x561   :  { %v1509_v37 = vadd.f32 %v1508_v46, %v1460_v32  ;;  %2260 = vmatmul.msk.f32.gmra.mxu3 %vm88_vm0, %v2210_v13 }
 0x564   :  { %v1333_v52 = vpop.f32.mrf.mxu3 }
 0x565   :  { %v1334_v0 = vadd.f32 %v3344_v24, %v1333_v52  ;;  %v2224_v52 = vld [vmem:[%s4046_s0 + $0x2d8] sm:$0xff] }
 0x567   :  { %v1461_v5 = vmax.f32 %v1334_v0, 0.0 }
 0x569   :  { %v1510_v62 = vadd.f32 %v1509_v37, %v1461_v5  ;;  %2261 = vmatmul.msk.f32.gmra.mxu3 %vm88_vm0, %v2211_v1 }
 0x56c   :  { %v1336_v54 = vpop.f32.mrf.mxu3 }
 0x56d   :  { %v1337_v49 = vadd.f32 %v3344_v24, %v1336_v54 }
 0x56f   :  { %v1462_v9 = vmax.f32 %v1337_v49, 0.0 }
 0x571   :  { %v1511_v11 = vadd.f32 %v1510_v62, %v1462_v9  ;;  %2262 = vmatmul.msk.f32.gmra.mxu3 %vm88_vm0, %v2212_v7 }
 0x574   :  { %v1339_v12 = vpop.f32.mrf.mxu3 }
 0x575   :  { %v1340_v47 = vadd.f32 %v3344_v24, %v1339_v12 }
 0x577   :  { %v1463_v16 = vmax.f32 %v1340_v47, 0.0  ;;  %v2225_v47 = vld [vmem:[%s4046_s0 + $0x2e0] sm:$0xff] }
 0x579   :  { %v1512_v17 = vadd.f32 %v1511_v11, %v1463_v16  ;;  %2263 = vmatmul.msk.f32.gmra.mxu3 %vm88_vm0, %v2213_v15 }
 0x57c   :  { %v1342_v60 = vpop.f32.mrf.mxu3 }
 0x57d   :  { %v1343_v19 = vadd.f32 %v3344_v24, %v1342_v60 }
 0x57f   :  { %v1464_v20 = vmax.f32 %v1343_v19, 0.0 }
 0x581   :  { %v1513_v21 = vadd.f32 %v1512_v17, %v1464_v20  ;;  %2264 = vmatmul.msk.f32.gmra.mxu3 %vm88_vm0, %v2214_v48  ;;  %v2226_v48 = vld [vmem:[%s4046_s0 + $0x2e8] sm:$0xff] }
 0x584   :  { %v1345_v22 = vpop.f32.mrf.mxu3 }
 0x585   :  { %v1346_v33 = vadd.f32 %v3344_v24, %v1345_v22 }
 0x587   :  { %v1465_v3 = vmax.f32 %v1346_v33, 0.0 }
 0x589   :  { %v1514_v27 = vadd.f32 %v1513_v21, %v1465_v3  ;;  %2265 = vmatmul.msk.f32.gmra.mxu3 %vm88_vm0, %v2215_v61  ;;  %1648 = vmatpush.msrb.mxu1 %v1465_v3  ;;  %v2227_v61 = vld [vmem:[%s4046_s0 + $0x2f0] sm:$0xff] }
 0x58b   :  { %1649 = vmatpush.msrb.mxu1 %v1464_v20 }
 0x58c   :  { %v1348_v30 = vpop.f32.mrf.mxu3 }
 0x58d   :  { %1650 = vmatpush.msrb.mxu1 %v1463_v16 }
 0x58f   :  { %1651 = vmatpush.msrb.mxu1 %v1462_v9 }
 0x591   :  { %2266 = vmatmul.msk.f32.gmra.mxu3 %vm88_vm0, %v2216_v34  ;;  %1652 = vmatpush.msrb.mxu1 %v1461_v5 }
 0x593   :  { %1653 = vmatpush.msrb.mxu1 %v1460_v32 }
 0x594   :  { %v1351_v38 = vpop.f32.mrf.mxu3 }
 0x595   :  { %1654 = vmatpush.msrb.mxu1 %v1459_v4 }
 0x597   :  { %1655 = vmatpush.msrb.mxu1 %v1458_v55 }
 0x599   :  { %2267 = vmatmul.msk.f32.gmra.mxu3 %vm88_vm0, %v2217_v40  ;;  %1656 = vmatpush.msrb.mxu1 %v1457_v6 }
 0x59b   :  { %1657 = vmatpush.msrb.mxu1 %v1456_v44 }
 0x59c   :  { %v1354_v25 = vpop.f32.mrf.mxu3 }
 0x59d   :  { %1658 = vmatpush.msrb.mxu1 %v1455_v35 }
 0x59f   :  { %1659 = vmatpush.msrb.mxu1 %v1454_v31  ;;  %v3486_v31 = vadd.f32 %v3344_v24, %v1354_v25 }
 0x5a1   :  { %2268 = vmatmul.msk.f32.gmra.mxu3 %vm88_vm0, %v2218_v57  ;;  %1660 = vmatpush.msrb.mxu1 %v1453_v28  ;;  %v1468_v39 = vmax.f32 %v3486_v31, 0.0  ;;  %v1562_v31 = vld [vmem:[%s4053_s7 + $0x28] sm:$0xff] }
 0x5a3   :  { %1661 = vmatpush.msrb.mxu1 %v1452_v23  ;;  %v3481_v23 = vadd.f32 %v3344_v24, %v1351_v38  ;;  %v2228_v38 = vld [vmem:[%s4046_s0 + $0x2f8] sm:$0xff] }
 0x5a4   :  { %v1357_v56 = vpop.f32.mrf.mxu3 }
 0x5a5   :  { %1662 = vmatpush.msrb.mxu1 %v1451_v10  ;;  %v1467_v44 = vmax.f32 %v3481_v23, 0.0  ;;  %v3490_v42 = vadd.f32 %v3344_v24, %v1357_v56  ;;  %v1565_v23 = vld [vmem:[%s4053_s7 + $0x40] sm:$0xff] }
 0x5a7   :  { %1663 = vmatpush.msrb.mxu1 %v1450_v63  ;;  %v3478_v63 = vadd.f32 %v3344_v24, %v1348_v30  ;;  %v1469_v51 = vmax.f32 %v3490_v42, 0.0  ;;  %v1561_v42 = vld [vmem:[%s4053_s7 + $0x20] sm:$0xff] }
 0x5a9   :  { %2269 = vmatmul.msk.f32.gmra.mxu3 %vm88_vm0, %v2219_v29  ;;  %v1466_v28 = vmax.f32 %v3478_v63, 0.0  ;;  %v2229_v29 = vld [vmem:[%s4046_s0 + $0x300] sm:$0xff]  ;;  %v1566_v63 = vld [vmem:[%s4053_s7 + $0x48] sm:$0xff] }
 0x5ab   :  { %v1515_v6 = vadd.f32 %v1514_v27, %v1466_v28 }
 0x5ac   :  { %v1360_v26 = vpop.f32.mrf.mxu3 }
 0x5ad   :  { %v3499_v50 = vadd.f32 %v3344_v24, %v1360_v26  ;;  %v1516_v55 = vadd.f32 %v1515_v6, %v1467_v44 }
 0x5af   :  { %v1517_v45 = vadd.f32 %v1516_v55, %v1468_v39  ;;  %v1470_v36 = vmax.f32 %v3499_v50, 0.0  ;;  %v2231_v55 = vld [vmem:[%s4046_s0 + $0x310] sm:$0xff]  ;;  %v1558_v50 = vld [vmem:[%s4053_s7 + $0x8] sm:$0xff] }
 0x5b1   :  { %2270 = vmatmul.msk.f32.gmra.mxu3 %vm88_vm0, %v2220_v8  ;;  %v1518_v46 = vadd.f32 %v1517_v45, %v1469_v51 }
 0x5b3   :  { %v1519_v0 = vadd.f32 %v1518_v46, %v1470_v36 }
 0x5b4   :  { %v1363_v14 = vpop.f32.mrf.mxu3 }
 0x5b5   :  { %v3505_v4 = vadd.f32 %v3344_v24, %v1363_v14 }
 0x5b7   :  { %v1471_v32 = vmax.f32 %v3505_v4, 0.0 }
 0x5b9   :  { %2271 = vmatmul.msk.f32.gmra.mxu3 %vm88_vm0, %v2221_v53  ;;  %v1520_v62 = vadd.f32 %v1519_v0, %v1471_v32 }
 0x5bc   :  { %v1366_v10 = vpop.f32.mrf.mxu3 }
 0x5bd   :  { %v3512_v58 = vadd.f32 %v3344_v24, %v1366_v10  ;;  %v2230_v10 = vld [vmem:[%s4046_s0 + $0x308] sm:$0xff] }
 0x5bf   :  { %v1472_v1 = vmax.f32 %v3512_v58, 0.0 }
 0x5c1   :  { %2272 = vmatmul.msk.f32.gmra.mxu3 %vm88_vm0, %v2222_v18  ;;  %v1521_v49 = vadd.f32 %v1520_v62, %v1472_v1 }
 0x5c4   :  { %v1369_v35 = vpop.f32.mrf.mxu3 }
 0x5c5   :  { %v3518_v37 = vadd.f32 %v3344_v24, %v1369_v35 }
 0x5c7   :  { %v1473_v54 = vmax.f32 %v3518_v37, 0.0  ;;  %v2232_v37 = vld [vmem:[%s4046_s0 + $0x318] sm:$0xff]  ;;  %s2381_s0 = smov 16  }
 0x5c9   :  { %2273 = vmatmul.msk.f32.gmra.mxu3 %vm88_vm0, %v2223_v2  ;;  %v1522_v11 = vadd.f32 %v1521_v49, %v1473_v54 }
 0x5cc   :  { %v1372_v13 = vpop.f32.mrf.mxu3 }
 0x5cd   :  { %v1373_v5 = vadd.f32 %v3344_v24, %v1372_v13 }
 0x5cf   :  { %v1474_v7 = vmax.f32 %v1373_v5, 0.0  ;;  %v1557_v5 = vld [vmem:[%s4053_s7] sm:$0xff] }
 0x5d0   :  { %1664 = vmatmul.f32.vlgmr.msrb.gmra.mxu1 %v1557_v5 }
 0x5d1   :  { %2274 = vmatmul.msk.f32.gmra.mxu3 %vm88_vm0, %v2224_v52  ;;  %v1523_v15 = vadd.f32 %v1522_v11, %v1474_v7 }
 0x5d4   :  { %v1375_v9 = vpop.f32.mrf.mxu3 }
 0x5d5   :  { %v1376_v12 = vadd.f32 %v3344_v24, %v1375_v9 }
 0x5d7   :  { %v1475_v16 = vmax.f32 %v1376_v12, 0.0  ;;  %v1574_v12 = vld [vmem:[%s4053_s7 + $0x88] sm:$0xff] }
 0x5d8   :  { %1667 = vmatmul.f32.gmra.mxu1 %v1561_v42 }
 0x5d9   :  { %v1524_v17 = vadd.f32 %v1523_v15, %v1475_v16  ;;  %2275 = vmatmul.msk.f32.gmra.mxu3 %vm88_vm0, %v2225_v47 }
 0x5dc   :  { %v1378_v60 = vpop.f32.mrf.mxu3 }
 0x5dd   :  { %v1379_v19 = vadd.f32 %v3344_v24, %v1378_v60 }
 0x5df   :  { %v1476_v20 = vmax.f32 %v1379_v19, 0.0 }
 0x5e0   :  { %1670 = vmatmul.f32.gmra.mxu1 %v1565_v23 }
 0x5e1   :  { %v1525_v21 = vadd.f32 %v1524_v17, %v1476_v20  ;;  %2276 = vmatmul.msk.f32.gmra.mxu3 %vm88_vm0, %v2226_v48  ;;  %v1577_v17 = vld [vmem:[%s4053_s7 + $0xa0] sm:$0xff] }
 0x5e4   :  { %v1381_v22 = vpop.f32.mrf.mxu3 }
 0x5e5   :  { %v1382_v33 = vadd.f32 %v3344_v24, %v1381_v22 }
 0x5e7   :  { %v1477_v3 = vmax.f32 %v1382_v33, 0.0 }
 0x5e9   :  { %v1526_v27 = vadd.f32 %v1525_v21, %v1477_v3  ;;  %2277 = vmatmul.msk.f32.gmra.mxu3 %vm88_vm0, %v2227_v61 }
 0x5ec   :  { %v1384_v30 = vpop.f32.mrf.mxu3 }
 0x5ed   :  { %v1385_v34 = vadd.f32 %v3344_v24, %v1384_v30  ;;  %v1578_v30 = vld [vmem:[%s4053_s7 + $0xa8] sm:$0xff] }
 0x5ef   :  { %v1478_v40 = vmax.f32 %v1385_v34, 0.0 }
 0x5f1   :  { %v1527_v25 = vadd.f32 %v1526_v27, %v1478_v40  ;;  %2278 = vmatmul.msk.f32.gmra.mxu3 %vm88_vm0, %v2228_v38 }
 0x5f4   :  { %v1387_v57 = vpop.f32.mrf.mxu3 }
 0x5f5   :  { %v1388_v56 = vadd.f32 %v3344_v24, %v1387_v57 }
 0x5f7   :  { %v1479_v26 = vmax.f32 %v1388_v56, 0.0 }
 0x5f9   :  { %v1528_v8 = vadd.f32 %v1527_v25, %v1479_v26  ;;  %2279 = vmatmul.msk.f32.gmra.mxu3 %vm88_vm0, %v2229_v29  ;;  %v1581_v25 = vld [vmem:[%s4053_s7 + $0xc0] sm:$0xff] }
 0x5fc   :  { %v1390_v14 = vpop.f32.mrf.mxu3 }
 0x5fd   :  { %v1391_v53 = vadd.f32 %v3344_v24, %v1390_v14 }
 0x5ff   :  { %v1480_v18 = vmax.f32 %v1391_v53, 0.0 }
 0x601   :  { %v1529_v35 = vadd.f32 %v1528_v8, %v1480_v18  ;;  %2280 = vmatmul.msk.f32.gmra.mxu3 %vm88_vm0, %v2230_v10  ;;  %v1582_v10 = vld [vmem:[%s4053_s7 + $0xc8] sm:$0xff] }
 0x604   :  { %v1393_v2 = vpop.f32.mrf.mxu3 }
 0x605   :  { %v1394_v6 = vadd.f32 %v3344_v24, %v1393_v2  ;;  %v1585_v2 = vld [vmem:[%s4053_s7 + $0xe0] sm:$0xff] }
 0x607   :  { %v1481_v45 = vmax.f32 %v1394_v6, 0.0 }
 0x609   :  { %v1530_v13 = vadd.f32 %v1529_v35, %v1481_v45  ;;  %2281 = vmatmul.msk.f32.gmra.mxu3 %vm88_vm0, %v2231_v55  ;;  %1704 = vmatpush.msrb.mxu2 %v1481_v45  ;;  %v1882_v55 = vld [vmem:[%s4049_s3 + $0x50] sm:$0xff] }
 0x60b   :  { %1705 = vmatpush.msrb.mxu2 %v1480_v18 }
 0x60c   :  { %v1396_v46 = vpop.f32.mrf.mxu3 }
 0x60d   :  { %1706 = vmatpush.msrb.mxu2 %v1479_v26 }
 0x60f   :  { %1707 = vmatpush.msrb.mxu2 %v1478_v40 }
 0x611   :  { %2282 = vmatmul.msk.f32.gmra.mxu3 %vm88_vm0, %v2232_v37  ;;  %1708 = vmatpush.msrb.mxu2 %v1477_v3 }
 0x613   :  { %1709 = vmatpush.msrb.mxu2 %v1476_v20 }
 0x614   :  { %v1399_v52 = vpop.f32.mrf.mxu3 }
 0x615   :  { %1710 = vmatpush.msrb.mxu2 %v1475_v16  ;;  %v3620_v62 = vadd.f32 %v3344_v24, %v1399_v52  ;;  %v1589_v52 = vld [vmem:[%s4053_s7 + $0x100] sm:$0xff] }
 0x617   :  { %1711 = vmatpush.msrb.mxu2 %v1474_v7  ;;  %v1483_v9 = vmax.f32 %v3620_v62, 0.0  ;;  %v1563_v62 = vld [vmem:[%s4053_s7 + $0x30] sm:$0xff] }
 0x619   :  { %1712 = vmatpush.msrb.mxu2 %v1473_v54 }
 0x61b   :  { %1713 = vmatpush.msrb.mxu2 %v1472_v1  ;;  %v1573_v1 = vld [vmem:[%s4053_s7 + $0x80] sm:$0xff] }
 0x61c   :  { %v1402_v0 = vpop.f32.mrf.mxu3 }
 0x61d   :  { %1714 = vmatpush.msrb.mxu2 %v1471_v32  ;;  %v3614_v32 = vadd.f32 %v3344_v24, %v1396_v46  ;;  %v3624_v49 = vadd.f32 %v3344_v24, %v1402_v0  ;;  %v1586_v46 = vld [vmem:[%s4053_s7 + $0xe8] sm:$0xff] }
 0x61f   :  { %1715 = vmatpush.msrb.mxu2 %v1470_v36  ;;  %v1570_v36 = vld [vmem:[%s4053_s7 + $0x68] sm:$0xff]  ;;  %v1482_v54 = vmax.f32 %v3614_v32, 0.0  ;;  %v1484_v15 = vmax.f32 %v3624_v49, 0.0  ;;  %v1568_v49 = vld [vmem:[%s4053_s7 + $0x58] sm:$0xff] }
 0x620   :  { %v1572_v32 = vld [vmem:[%s4053_s7 + $0x78] sm:$0xff] }
 0x621   :  { %1716 = vmatpush.msrb.mxu2 %v1469_v51  ;;  %v1531_v47 = vadd.f32 %v1530_v13, %v1482_v54 }
 0x623   :  { %1717 = vmatpush.msrb.mxu2 %v1468_v39  ;;  %v1883_v39 = vld [vmem:[%s4049_s3 + $0x58] sm:$0xff]  ;;  %v1532_v60 = vadd.f32 %v1531_v47, %v1483_v9 }
 0x624   :  { %v1405_v58 = vpop.f32.mrf.mxu3  ;;  %1896 = vmatpush.msrb.mxu0 %v1883_v39  ;;  %v1597_v39 = vld [vmem:[%s4053_s7 + $0x140] sm:$0xff] }
 0x625   :  { %1718 = vmatpush.msrb.mxu2 %v1467_v44  ;;  %v3628_v11 = vadd.f32 %v3344_v24, %v1405_v58  ;;  %v1533_v20 = vadd.f32 %v1532_v60, %v1484_v15 }
 0x626   :  { %1897 = vmatpush.msrb.mxu0 %v1882_v55 }
 0x627   :  { %1719 = vmatpush.msrb.mxu2 %v1466_v28  ;;  %v1569_v28 = vld [vmem:[%s4053_s7 + $0x60] sm:$0xff]  ;;  %v1485_v19 = vmax.f32 %v3628_v11, 0.0 }
 0x628   :  { %1720 = vmatmul.f32.vlgmr.msrb.gmra.mxu2 %v1558_v50  ;;  %1673 = vmatmul.f32.gmra.mxu1 %v1569_v28  ;;  %v1590_v50 = vld [vmem:[%s4053_s7 + $0x108] sm:$0xff] }
 0x629   :  { %v1534_v61 = vadd.f32 %v1533_v20, %v1485_v19 }
 0x62c   :  { %v1408_v51 = vpop.f32.mrf.mxu3 }
 0x62d   :  { %v3637_v16 = vadd.f32 %v3344_v24, %v1408_v51  ;;  %v1593_v51 = vld [vmem:[%s4053_s7 + $0x120] sm:$0xff] }
 0x62f   :  { %v1486_v21 = vmax.f32 %v3637_v16, 0.0  ;;  %v1559_v16 = vld [vmem:[%s4053_s7 + $0x10] sm:$0xff] }
 0x630   :  { %1723 = vmatmul.f32.gmra.mxu2 %v1562_v31  ;;  %1676 = vmatmul.f32.gmra.mxu1 %v1573_v1 }
 0x631   :  { %v1535_v34 = vadd.f32 %v1534_v61, %v1486_v21  ;;  %v1602_v61 = vld [vmem:[%s4053_s7 + $0x168] sm:$0xff] }
 0x634   :  { %v1411_v44 = vpop.f32.mrf.mxu3 }
 0x635   :  { %v3646_v48 = vadd.f32 %v3344_v24, %v1411_v44 }
 0x637   :  { %v1487_v3 = vmax.f32 %v3646_v48, 0.0 }
 0x638   :  { %1726 = vmatmul.f32.gmra.mxu2 %v1566_v63  ;;  %1679 = vmatmul.f32.gmra.mxu1 %v1577_v17  ;;  %v1594_v63 = vld [vmem:[%s4053_s7 + $0x128] sm:$0xff]  ;;  %v1601_v17 = vld [vmem:[%s4053_s7 + $0x160] sm:$0xff] }
 0x639   :  { %v1536_v57 = vadd.f32 %v1535_v34, %v1487_v3  ;;  %v1605_v34 = vld [vmem:[%s4053_s7 + $0x180] sm:$0xf] }
 0x63c   :  { %v1414_v4 = vpop.f32.mrf.mxu3 }
 0x63d   :  { %v3652_v22 = vadd.f32 %v3344_v24, %v1414_v4 }
 0x63f   :  { %v1488_v38 = vmax.f32 %v3652_v22, 0.0  ;;  %v1576_v22 = vld [vmem:[%s4053_s7 + $0x98] sm:$0xff] }
 0x640   :  { %1729 = vmatmul.f32.gmra.mxu2 %v1570_v36  ;;  %1682 = vmatmul.f32.gmra.mxu1 %v1581_v25  ;;  %v1881_v36 = vld [vmem:[%s4049_s3 + $0x48] sm:$0xff] }
 0x641   :  { %v1537_v29 = vadd.f32 %v1536_v57, %v1488_v38  ;;  %1898 = vmatpush.msrb.mxu0 %v1881_v36 }
 0x644   :  { %v1417_v7 = vpop.f32.mrf.mxu3 }
 0x645   :  { %v3658_v27 = vadd.f32 %v3344_v24, %v1417_v7 }
 0x647   :  { %v1489_v56 = vmax.f32 %v3658_v27, 0.0  ;;  %v1564_v27 = vld [vmem:[%s4053_s7 + $0x38] sm:$0xff] }
 0x648   :  { %1732 = vmatmul.f32.gmra.mxu2 %v1574_v12  ;;  %1685 = vmatmul.f32.gmra.mxu1 %v1585_v2  ;;  %v1598_v12 = vld [vmem:[%s4053_s7 + $0x148] sm:$0xff] }
 0x649   :  { %v1538_v14 = vadd.f32 %v1537_v29, %v1489_v56 }
 0x64c   :  { %v1420_v33 = vpop.f32.mrf.mxu3 }
 0x64d   :  { %v3667_v40 = vadd.f32 %v3344_v24, %v1420_v33 }
 0x64f   :  { %v1490_v26 = vmax.f32 %v3667_v40, 0.0  ;;  %v3763_v40 = vpop.f32.mrf.mxu1 }
 0x650   :  { %1735 = vmatmul.f32.gmra.mxu2 %v1578_v30  ;;  %1688 = vmatmul.f32.gmra.mxu1 %v1589_v52 }
 0x651   :  { %v1539_v18 = vadd.f32 %v1538_v14, %v1490_v26 }
 0x654   :  { %v1423_v8 = vpop.f32.mrf.mxu3 }
 0x655   :  { %v3681_v53 = vadd.f32 %v3344_v24, %v1423_v8  ;;  %v1606_v8 = vld [vmem:[%s4053_s7 + $0x188] sm:$0xf] }
 0x657   :  { %v1491_v35 = vmax.f32 %v3681_v53, 0.0  ;;  %v3780_v48 = vpop.f32.mrf.mxu1 }
 0x658   :  { %1738 = vmatmul.f32.gmra.mxu2 %v1582_v10  ;;  %1691 = vmatmul.f32.gmra.mxu1 %v1593_v51  ;;  %v1880_v10 = vld [vmem:[%s4049_s3 + $0x40] sm:$0xff] }
 0x659   :  { %v1540_v6 = vadd.f32 %v1539_v18, %v1491_v35  ;;  %1899 = vmatpush.msrb.mxu0 %v1880_v10  ;;  %v1599_v10 = vld [vmem:[%s4053_s7 + $0x150] sm:$0xff] }
 0x65c   :  { %v1426_v45 = vpop.f32.mrf.mxu3 }
 0x65d   :  { %v1427_v13 = vadd.f32 %v3344_v24, %v1426_v45 }
 0x65f   :  { %v1492_v37 = vmax.f32 %v1427_v13, 0.0 }
 0x660   :  { %1741 = vmatmul.f32.gmra.mxu2 %v1586_v46  ;;  %1694 = vmatmul.f32.gmra.mxu1 %v1597_v39  ;;  %v1592_v39 = vld [vmem:[%s4053_s7 + $0x118] sm:$0xff] }
 0x661   :  { %v1541_v0 = vadd.f32 %v1540_v6, %v1492_v37 }
 0x664   :  { %v1429_v5 = vpop.f32.mrf.mxu3 }
 0x665   :  { %v1430_v58 = vadd.f32 %v3344_v24, %v1429_v5 }
 0x667   :  { %v1493_v42 = vmax.f32 %v1430_v58, 0.0  ;;  %v1584_v58 = vld [vmem:[%s4053_s7 + $0xd8] sm:$0xff] }
 0x668   :  { %1744 = vmatmul.f32.gmra.mxu2 %v1590_v50  ;;  %1697 = vmatmul.f32.gmra.mxu1 %v1601_v17 }
 0x669   :  { %v1542_v31 = vadd.f32 %v1541_v0, %v1493_v42  ;;  %v1879_v0 = vld [vmem:[%s4049_s3 + $0x38] sm:$0xff] }
 0x66a   :  { %1900 = vmatpush.msrb.mxu0 %v1879_v0  ;;  %v1607_v0 = vld [vmem:[%s4053_s7 + $0x190] sm:$0xf] }
 0x66c   :  { %v1432_v23 = vpop.f32.mrf.mxu3 }
 0x66d   :  { %v1433_v44 = vadd.f32 %v3344_v24, %v1432_v23  ;;  %v1588_v23 = vld [vmem:[%s4053_s7 + $0xf8] sm:$0xff] }
 0x66f   :  { %v1494_v28 = vmax.f32 %v1433_v44, 0.0 }
 0x670   :  { %1747 = vmatmul.f32.gmra.mxu2 %v1594_v63  ;;  %1700 = vmatmul.f32.gmra.mxu1 %v1605_v34  ;;  %v1583_v63 = vld [vmem:[%s4053_s7 + $0xd0] sm:$0xff] }
 0x671   :  { %v1543_v4 = vadd.f32 %v1542_v31, %v1494_v28  ;;  %v1877_v31 = vld [vmem:[%s4049_s3 + $0x28] sm:$0xff] }
 0x674   :  { %v1435_v1 = vpop.f32.mrf.mxu3 }
 0x675   :  { %v1436_v7 = vadd.f32 %v3344_v24, %v1435_v1  ;;  %v1587_v1 = vld [vmem:[%s4053_s7 + $0xf0] sm:$0xff] }
 0x677   :  { %v1495_v47 = vmax.f32 %v1436_v7, 0.0  ;;  %v1596_v7 = vld [vmem:[%s4053_s7 + $0x138] sm:$0xff] }
 0x678   :  { %1750 = vmatmul.f32.gmra.mxu2 %v1598_v12 }
 0x679   :  { %v1544_v60 = vadd.f32 %v1543_v4, %v1495_v47 }
 0x67c   :  { %v1438_v20 = vpop.f32.mrf.mxu3 }
 0x67d   :  { %v1439_v33 = vadd.f32 %v3344_v24, %v1438_v20  ;;  %v1876_v20 = vld [vmem:[%s4049_s3 + $0x20] sm:$0xff] }
 0x67f   :  { %v1496_v30 = vmax.f32 %v1439_v33, 0.0  ;;  %v1600_v33 = vld [vmem:[%s4053_s7 + $0x158] sm:$0xff] }
 0x680   :  { %1753 = vmatmul.f32.gmra.mxu2 %v1602_v61 }
 0x681   :  { %v1545_v25 = vadd.f32 %v1544_v60, %v1496_v30  ;;  %v1591_v60 = vld [vmem:[%s4053_s7 + $0x110] sm:$0xff] }
 0x684   :  { %v1441_v57 = vpop.f32.mrf.mxu3 }
 0x685   :  { %v1442_v29 = vadd.f32 %v3344_v24, %v1441_v57  ;;  %v1595_v57 = vld [vmem:[%s4053_s7 + $0x130] sm:$0xff] }
 0x687   :  { %v1497_v14 = vmax.f32 %v1442_v29, 0.0  ;;  %v1604_v29 = vld [vmem:[%s4053_s7 + $0x178] sm:$0xff] }
 0x688   :  { %1756 = vmatmul.f32.gmra.mxu2 %v1606_v8 }
 0x689   :  { %v1546_v18 = vadd.f32 %v1545_v25, %v1497_v14  ;;  %1760 = vmatpush.msra.mxu1 %v1497_v14  ;;  %v1875_v25 = vld [vmem:[%s4049_s3 + $0x18] sm:$0xff] }
 0x68b   :  { %1761 = vmatpush.msra.mxu1 %v1496_v30 }
 0x68c   :  { %v1444_v2 = vpop.f32.mrf.mxu3 }
 0x68d   :  { %v1445_v6 = vadd.f32 %v3344_v24, %v1444_v2  ;;  %1762 = vmatpush.msra.mxu1 %v1495_v47  ;;  %v1608_v2 = vld [vmem:[%s4053_s7 + $0x198] sm:$0xf] }
 0x68f   :  { %v1498_v55 = vmax.f32 %v1445_v6, 0.0  ;;  %1763 = vmatpush.msra.mxu1 %v1494_v28 }
 0x691   :  { %v1547_v45 = vadd.f32 %v1546_v18, %v1498_v55  ;;  %1764 = vmatpush.msra.mxu1 %v1493_v42  ;;  %v1579_v42 = vld [vmem:[%s4053_s7 + $0xb0] sm:$0xff] }
 0x693   :  { %1765 = vmatpush.msra.mxu1 %v1492_v37 }
 0x694   :  { %v1447_v13 = vpop.f32.mrf.mxu3 }
 0x695   :  { %v1448_v46 = vadd.f32 %v3344_v24, %v1447_v13  ;;  %1766 = vmatpush.msra.mxu1 %v1491_v35  ;;  %v1560_v24 = vld [vmem:[%s4053_s7 + $0x18] sm:$0xff]  ;;  %v1575_v35 = vld [vmem:[%s4053_s7 + $0x90] sm:$0xff] }
 0x697   :  { %v1499_v52 = vmax.f32 %v1448_v46, 0.0  ;;  %1767 = vmatpush.msra.mxu1 %v1490_v26  ;;  %v1580_v26 = vld [vmem:[%s4053_s7 + $0xb8] sm:$0xff] }
 0x699   :  { %v3751_v5 = vadd.f32 %v1547_v45, %v1499_v52  ;;  %1768 = vmatpush.msra.mxu1 %v1489_v56  ;;  %1830 = vmatpush.msra.mxu2 %v1499_v52  ;;  %v1603_v45 = vld [vmem:[%s4053_s7 + $0x170] sm:$0xff] }
 0x69b   :  { %1769 = vmatpush.msra.mxu1 %v1488_v38  ;;  %1831 = vmatpush.msra.mxu2 %v1498_v55  ;;  %v1571_v38 = vld [vmem:[%s4053_s7 + $0x70] sm:$0xff] }
 0x69c   :  { %2283 = vmatmul.msk.f32.vlgmr.msra.gmra.mxu2 %vm572_vm1, %v1560_v24  ;;  %v1874_v24 = vld [vmem:[%s4049_s3 + $0x10] sm:$0xff] }
 0x69d   :  { %1770 = vmatpush.msra.mxu1 %v1487_v3 }
 0x69f   :  { %1771 = vmatpush.msra.mxu1 %v1486_v21  ;;  %v1878_v21 = vld [vmem:[%s4049_s3 + $0x30] sm:$0xff] }
 0x6a0   :  { %1901 = vmatpush.msrb.mxu0 %v1878_v21 }
 0x6a1   :  { %1772 = vmatpush.msra.mxu1 %v1485_v19 }
 0x6a2   :  { %1902 = vmatpush.msrb.mxu0 %v1877_v31 }
 0x6a3   :  { %1773 = vmatpush.msra.mxu1 %v1484_v15  ;;  %v1567_v15 = vld [vmem:[%s4053_s7 + $0x50] sm:$0xff] }
 0x6a4   :  { %2284 = vmatmul.msk.f32.gmra.mxu2 %vm572_vm1, %v1564_v27  ;;  %1903 = vmatpush.msrb.mxu0 %v1876_v20  ;;  %v1873_v27 = vld [vmem:[%s4049_s3 + $0x8] sm:$0xff] }
 0x6a5   :  { %1774 = vmatpush.msra.mxu1 %v1483_v9  ;;  %v3793_v9 = vpop.f32.mrf.mxu1 }
 0x6a6   :  { %1904 = vmatpush.msrb.mxu0 %v1875_v25 }
 0x6a7   :  { %1775 = vmatpush.msra.mxu1 %v1482_v54 }
 0x6a8   :  { %1776 = vmatmul.f32.vlgmr.msra.gmra.mxu1 %v1559_v16  ;;  %1905 = vmatpush.msrb.mxu0 %v1874_v24  ;;  %v1872_v16 = vld [vmem:[%s4049_s3] sm:$0xff] }
 0x6aa   :  { %1906 = vmatpush.msrb.mxu0 %v1873_v27 }
 0x6ab   :  { %v3787_v11 = vpop.f32.mrf.mxu2 }
 0x6ac   :  { %2285 = vmatmul.msk.f32.gmra.mxu2 %vm572_vm1, %v1568_v49  ;;  %1907 = vmatpush.msrb.mxu0 %v1872_v16  ;;  %v1722_v21 = vadd.f32 %v3787_v11, %v3763_v40 }
 0x6ad   :  { %v3804_v19 = vpop.f32.mrf.mxu1 }
 0x6b0   :  { %1779 = vmatmul.f32.gmra.mxu1 %v1563_v62 }
 0x6b3   :  { %v3798_v54 = vpop.f32.mrf.mxu2 }
 0x6b4   :  { %2286 = vmatmul.msk.f32.gmra.mxu2 %vm572_vm1, %v1572_v32 }
 0x6b5   :  { %v3818_v56 = vpop.f32.mrf.mxu1 }
 0x6b8   :  { %1782 = vmatmul.f32.gmra.mxu1 %v1567_v15 }
 0x6bb   :  { %v3812_v3 = vpop.f32.mrf.mxu2 }
 0x6bc   :  { %2287 = vmatmul.msk.f32.gmra.mxu2 %vm572_vm1, %v1576_v22 }
 0x6bd   :  { %v3829_v37 = vpop.f32.mrf.mxu1 }
 0x6c0   :  { %1785 = vmatmul.f32.gmra.mxu1 %v1571_v38 }
 0x6c3   :  { %v3823_v53 = vpop.f32.mrf.mxu2 }
 0x6c4   :  { %2288 = vmatmul.msk.f32.gmra.mxu2 %vm572_vm1, %v1580_v26  ;;  %v1731_v11 = vadd.f32 %v3823_v53, %v3804_v19 }
 0x6c5   :  { %v1683_v51 = vpop.f32.mrf.mxu1 }
 0x6c8   :  { %1788 = vmatmul.f32.gmra.mxu1 %v1575_v35 }
 0x6cb   :  { %v3834_v50 = vpop.f32.mrf.mxu2 }
 0x6cc   :  { %2289 = vmatmul.msk.f32.gmra.mxu2 %vm572_vm1, %v1584_v58  ;;  %v1725_v58 = vadd.f32 %v3798_v54, %v3780_v48  ;;  %v1734_v54 = vadd.f32 %v3834_v50, %v3818_v56 }
 0x6cd   :  { %v1686_v28 = vpop.f32.mrf.mxu1 }
 0x6d0   :  { %1791 = vmatmul.f32.gmra.mxu1 %v1579_v42 }
 0x6d3   :  { %v3846_v44 = vpop.f32.mrf.mxu2 }
 0x6d4   :  { %2290 = vmatmul.msk.f32.gmra.mxu2 %vm572_vm1, %v1588_v23 }
 0x6d5   :  { %v1689_v12 = vpop.f32.mrf.mxu1 }
 0x6d8   :  { %1794 = vmatmul.f32.gmra.mxu1 %v1583_v63  ;;  %v1728_v63 = vadd.f32 %v3812_v3, %v3793_v9  ;;  %v1737_v3 = vadd.f32 %v3846_v44, %v3829_v37 }
 0x6db   :  { %v1739_v4 = vpop.f32.mrf.mxu2 }
 0x6dc   :  { %2291 = vmatmul.msk.f32.gmra.mxu2 %vm572_vm1, %v1592_v39  ;;  %v3856_v36 = vadd.f32 %v1739_v4, %v1683_v51 }
 0x6dd   :  { %v1692_v30 = vpop.f32.mrf.mxu1 }
 0x6e0   :  { %1797 = vmatmul.f32.gmra.mxu1 %v1587_v1 }
 0x6e3   :  { %v1742_v47 = vpop.f32.mrf.mxu2 }
 0x6e4   :  { %2292 = vmatmul.msk.f32.gmra.mxu2 %vm572_vm1, %v1596_v7  ;;  %v3865_v17 = vadd.f32 %v1742_v47, %v1686_v28 }
 0x6e5   :  { %v1695_v18 = vpop.f32.mrf.mxu1 }
 0x6e8   :  { %1800 = vmatmul.f32.gmra.mxu1 %v1591_v60 }
 0x6eb   :  { %v1745_v61 = vpop.f32.mrf.mxu2 }
 0x6ec   :  { %2293 = vmatmul.msk.f32.gmra.mxu2 %vm572_vm1, %v1600_v33  ;;  %v3877_v34 = vadd.f32 %v1745_v61, %v1689_v12 }
 0x6ed   :  { %v1698_v13 = vpop.f32.mrf.mxu1 }
 0x6f0   :  { %1803 = vmatmul.f32.gmra.mxu1 %v1595_v57 }
 0x6f3   :  { %v1748_v8 = vpop.f32.mrf.mxu2 }
 0x6f4   :  { %2294 = vmatmul.msk.f32.gmra.mxu2 %vm572_vm1, %v1604_v29  ;;  %v3889_v14 = vadd.f32 %v1748_v8, %v1692_v30 }
 0x6f5   :  { %v1701_v49 = vpop.f32.mrf.mxu1 }
 0x6f8   :  { %1806 = vmatmul.f32.gmra.mxu1 %v1599_v10 }
 0x6fb   :  { %v1751_v6 = vpop.f32.mrf.mxu2 }
 0x6fc   :  { %2295 = vmatmul.msk.f32.gmra.mxu2 %vm572_vm1, %v1608_v2  ;;  %v3898_v55 = vadd.f32 %v1751_v6, %v1695_v18 }
 0x700   :  { %1809 = vmatmul.f32.gmra.mxu1 %v1603_v45 }
 0x703   :  { %v1754_v46 = vpop.f32.mrf.mxu2 }
 0x704   :  { %v3903_v52 = vadd.f32 %v1754_v46, %v1698_v13 }
 0x708   :  { %1812 = vmatmul.f32.gmra.mxu1 %v1607_v0 }
 0x70b   :  { %v1757_v62 = vpop.f32.mrf.mxu2 }
 0x70c   :  { %v3917_v32 = vadd.f32 %v1757_v62, %v1701_v49 }
 0x71f   :  { %v1833_v15 = vpop.f32.mrf.mxu2 }
 0x725   :  { %v1777_v22 = vpop.f32.mrf.mxu1 }
 0x726   :  { %v1778_v38 = vadd.f32 %v1777_v22, %v1722_v21 }
 0x727   :  { %v1836_v26 = vpop.f32.mrf.mxu2 }
 0x728   :  { %v1834_v35 = vadd.f32 %v1833_v15, %v1778_v38 }
 0x72a   :  { %1908 = vmatmul.f32.vlgmr.msrb.gmra.mxu0 %v1834_v35 }
 0x72d   :  { %v1780_v42 = vpop.f32.mrf.mxu1 }
 0x72e   :  { %v1781_v51 = vadd.f32 %v1780_v42, %v1725_v58 }
 0x72f   :  { %v1839_v31 = vpop.f32.mrf.mxu2 }
 0x730   :  { %v1837_v23 = vadd.f32 %v1836_v26, %v1781_v51 }
 0x732   :  { %1911 = vmatmul.f32.gmra.mxu0 %v1837_v23 }
 0x735   :  { %v1783_v28 = vpop.f32.mrf.mxu1 }
 0x736   :  { %v1784_v39 = vadd.f32 %v1783_v28, %v1728_v63 }
 0x737   :  { %v1842_v4 = vpop.f32.mrf.mxu2 }
 0x738   :  { %v1840_v40 = vadd.f32 %v1839_v31, %v1784_v39 }
 0x73a   :  { %1914 = vmatmul.f32.gmra.mxu0 %v1840_v40 }
 0x73d   :  { %v1786_v1 = vpop.f32.mrf.mxu1 }
 0x73e   :  { %v1787_v7 = vadd.f32 %v1786_v1, %v1731_v11 }
 0x73f   :  { %v1845_v12 = vpop.f32.mrf.mxu2 }
 0x740   :  { %v1843_v48 = vadd.f32 %v1842_v4, %v1787_v7 }
 0x742   :  { %1917 = vmatmul.f32.gmra.mxu0 %v1843_v48 }
 0x745   :  { %v1789_v47 = vpop.f32.mrf.mxu1 }
 0x746   :  { %v1790_v60 = vadd.f32 %v1789_v47, %v1734_v54 }
 0x747   :  { %v1848_v20 = vpop.f32.mrf.mxu2 }
 0x748   :  { %v1846_v9 = vadd.f32 %v1845_v12, %v1790_v60 }
 0x74a   :  { %1920 = vmatmul.f32.gmra.mxu0 %v1846_v9 }
 0x74d   :  { %v1792_v33 = vpop.f32.mrf.mxu1 }
 0x74e   :  { %v1793_v61 = vadd.f32 %v1792_v33, %v1737_v3 }
 0x74f   :  { %v1851_v30 = vpop.f32.mrf.mxu2 }
 0x750   :  { %v1849_v19 = vadd.f32 %v1848_v20, %v1793_v61 }
 0x752   :  { %1923 = vmatmul.f32.gmra.mxu0 %v1849_v19 }
 0x755   :  { %v1795_v53 = vpop.f32.mrf.mxu1 }
 0x756   :  { %v1796_v25 = vadd.f32 %v1795_v53, %v3856_v36 }
 0x757   :  { %v1854_v57 = vpop.f32.mrf.mxu2 }
 0x758   :  { %v1852_v29 = vadd.f32 %v1851_v30, %v1796_v25 }
 0x75a   :  { %1926 = vmatmul.f32.gmra.mxu0 %v1852_v29 }
 0x75d   :  { %v1798_v56 = vpop.f32.mrf.mxu1 }
 0x75e   :  { %v1799_v50 = vadd.f32 %v1798_v56, %v3865_v17 }
 0x75f   :  { %v1857_v8 = vpop.f32.mrf.mxu2 }
 0x760   :  { %v1855_v10 = vadd.f32 %v1854_v57, %v1799_v50 }
 0x762   :  { %1929 = vmatmul.f32.gmra.mxu0 %v1855_v10 }
 0x765   :  { %v1801_v18 = vpop.f32.mrf.mxu1 }
 0x766   :  { %v1802_v37 = vadd.f32 %v1801_v18, %v3877_v34 }
 0x767   :  { %v1860_v44 = vpop.f32.mrf.mxu2 }
 0x768   :  { %v1858_v2 = vadd.f32 %v1857_v8, %v1802_v37 }
 0x76a   :  { %1932 = vmatmul.f32.gmra.mxu0 %v1858_v2 }
 0x76d   :  { %v1804_v6 = vpop.f32.mrf.mxu1 }
 0x76e   :  { %v1805_v45 = vadd.f32 %v1804_v6, %v3889_v14 }
 0x76f   :  { %v1863_v36 = vpop.f32.mrf.mxu2 }
 0x770   :  { %v1861_v13 = vadd.f32 %v1860_v44, %v1805_v45 }
 0x772   :  { %1935 = vmatmul.f32.gmra.mxu0 %v1861_v13  ;;  %v1549_v13 = vrot.slane %v3751_v5, 4 }
 0x775   :  { %v1807_v46 = vpop.f32.mrf.mxu1 }
 0x776   :  { %v1808_v0 = vadd.f32 %v1807_v46, %v3898_v55  ;;  %v2343_v55 = vld [vmem:[%s4050_s4] ss:$0 sm:$0xff]  ;;  %v1550_v46 = vadd.f32 %v1549_v13, %v3751_v5 }
 0x777   :  { %v1866_v17 = vpop.f32.mrf.mxu2 }
 0x778   :  { %v1864_v24 = vadd.f32 %v1863_v36, %v1808_v0 }
 0x77a   :  { %1938 = vmatmul.f32.gmra.mxu0 %v1864_v24 }
 0x77d   :  { %v1810_v27 = vpop.f32.mrf.mxu1 }
 0x77e   :  { %v1811_v16 = vadd.f32 %v1810_v27, %v3903_v52  ;;  %v1551_v27 = vrot.slane %v1550_v46, 2 }
 0x77f   :  { %v1869_v62 = vpop.f32.mrf.mxu2 }
 0x780   :  { %v1867_v49 = vadd.f32 %v1866_v17, %v1811_v16 }
 0x782   :  { %1941 = vmatmul.f32.gmra.mxu0 %v1867_v49 }
 0x785   :  { %v1813_v34 = vpop.f32.mrf.mxu1 }
 0x786   :  { %v1814_v15 = vadd.f32 %v1813_v34, %v3917_v32  ;;  %v1552_v34 = vadd.f32 %v1551_v27, %v1550_v46 }
 0x788   :  { %v1870_v21 = vadd.f32 %v1869_v62, %v1814_v15 }
 0x78a   :  { %1944 = vmatmul.f32.gmra.mxu0 %v1870_v21  ;;  %v1553_v21 = vrot.slane %v1552_v34, 1 }
 0x78c   :  { %v1554_v5 = vadd.f32 %v1553_v21, %v1552_v34 }
 0x7a7   :  { %v1909_v14 = vpop.f32.mrf.mxu0 }
 0x7a8   :  { %v3943_v52 = vadd.f32 %v2343_v55, %v1909_v14 }
 0x7aa   :  { %v1948_v23 = vmax.f32 %v3943_v52, 0.0  ;;  %v1983_v52 = vld [vmem:[%s4054_s8 + $0x8] sm:$0xff] }
 0x7af   :  { %v1912_v22 = vpop.f32.mrf.mxu0 }
 0x7b0   :  { %v3941_v42 = vadd.f32 %v2343_v55, %v1912_v22 }
 0x7b2   :  { %v1949_v32 = vmax.f32 %v3941_v42, 0.0  ;;  %v2040_v42 = vld [vmem:[%s4051_s5 + $0x50] sm:$0xff] }
 0x7b4   :  { %v1961_v4 = vadd.f32 %v1949_v32, %v1948_v23 }
 0x7b7   :  { %v1915_v38 = vpop.f32.mrf.mxu0 }
 0x7b8   :  { %v3945_v51 = vadd.f32 %v2343_v55, %v1915_v38 }
 0x7ba   :  { %v1950_v63 = vmax.f32 %v3945_v51, 0.0  ;;  %v2039_v51 = vld [vmem:[%s4051_s5 + $0x48] sm:$0xff] }
 0x7bc   :  { %v1962_v1 = vadd.f32 %v1961_v4, %v1950_v63  ;;  %v2041_v4 = vld [vmem:[%s4051_s5 + $0x58] sm:$0xff] }
 0x7bf   :  { %v1918_v26 = vpop.f32.mrf.mxu0 }
 0x7c0   :  { %v3948_v31 = vadd.f32 %v2343_v55, %v1918_v26 }
 0x7c2   :  { %v1951_v40 = vmax.f32 %v3948_v31, 0.0  ;;  %v2045_v31 = vld [vmem:[%s4051_s5 + $0x78] sm:$0xff] }
 0x7c3   :  { %2050 = vmatpush.msrb.mxu2 %v2045_v31 }
 0x7c4   :  { %v1963_v48 = vadd.f32 %v1962_v1, %v1951_v40  ;;  %v1984_v1 = vld [vmem:[%s4054_s8 + $0x10] sm:$0xff] }
 0x7c7   :  { %v1921_v35 = vpop.f32.mrf.mxu0 }
 0x7c8   :  { %v1922_v28 = vadd.f32 %v2343_v55, %v1921_v35  ;;  %v1555_v35 = vmul.f32 %v1554_v5, %v3148_v43  ;;  %v2042_v43 = vld [vmem:[%s4051_s5 + $0x60] sm:$0xff] }
 0x7ca   :  { %v1952_v7 = vmax.f32 %v1922_v28, 0.0  ;;  %v2044_v28 = vld [vmem:[%s4051_s5 + $0x70] sm:$0xff] }
 0x7cb   :  { %2051 = vmatpush.msrb.mxu2 %v2044_v28 }
 0x7cc   :  { %v1964_v47 = vadd.f32 %v1963_v48, %v1952_v7  ;;  %v2031_v48 = vld [vmem:[%s4051_s5 + $0x8] sm:$0xff] }
 0x7cf   :  { %v1924_v58 = vpop.f32.mrf.mxu0 }
 0x7d0   :  { %v1925_v11 = vadd.f32 %v2343_v55, %v1924_v58 }
 0x7d2   :  { %v1953_v54 = vmax.f32 %v1925_v11, 0.0  ;;  %v2034_v11 = vld [vmem:[%s4051_s5 + $0x20] sm:$0xff] }
 0x7d4   :  { %v1965_v9 = vadd.f32 %v1964_v47, %v1953_v54  ;;  %v2030_v47 = vld [vmem:[%s4051_s5] sm:$0xff] }
 0x7d7   :  { %v1927_v39 = vpop.f32.mrf.mxu0 }
 0x7d8   :  { %v1928_v12 = vadd.f32 %v2343_v55, %v1927_v39  ;;  %v2043_v39 = vld [vmem:[%s4051_s5 + $0x68] sm:$0xff] }
 0x7d9   :  { %2052 = vmatpush.msrb.mxu2 %v2043_v39 }
 0x7da   :  { %v1954_v60 = vmax.f32 %v1928_v12, 0.0  ;;  %v2032_v12 = vld [vmem:[%s4051_s5 + $0x10] sm:$0xff] }
 0x7db   :  { %2053 = vmatpush.msrb.mxu2 %v2042_v43 }
 0x7dc   :  { %v1966_v33 = vadd.f32 %v1965_v9, %v1954_v60 }
 0x7dd   :  { %2054 = vmatpush.msrb.mxu2 %v2041_v4 }
 0x7df   :  { %v1930_v20 = vpop.f32.mrf.mxu0  ;;  %2055 = vmatpush.msrb.mxu2 %v2040_v42 }
 0x7e0   :  { %v1931_v3 = vadd.f32 %v2343_v55, %v1930_v20 }
 0x7e1   :  { %2056 = vmatpush.msrb.mxu2 %v2039_v51 }
 0x7e2   :  { %v1955_v61 = vmax.f32 %v1931_v3, 0.0 }
 0x7e4   :  { %v1967_v30 = vadd.f32 %v1966_v33, %v1955_v61 }
 0x7e7   :  { %v1933_v19 = vpop.f32.mrf.mxu0 }
 0x7e8   :  { %v1934_v53 = vadd.f32 %v2343_v55, %v1933_v19 }
 0x7ea   :  { %v1956_v25 = vmax.f32 %v1934_v53, 0.0 }
 0x7ec   :  { %v1968_v57 = vadd.f32 %v1967_v30, %v1956_v25  ;;  %v2344_v30 = vld [vmem:[%s4052_s6] ss:$0 sm:$0xff] }
 0x7ef   :  { %v1936_v29 = vpop.f32.mrf.mxu0 }
 0x7f0   :  { %v1937_v56 = vadd.f32 %v2343_v55, %v1936_v29 }
 0x7f2   :  { %v1957_v50 = vmax.f32 %v1937_v56, 0.0 }
 0x7f4   :  { %v1969_v8 = vadd.f32 %v1968_v57, %v1957_v50 }
 0x7f7   :  { %v1939_v10 = vpop.f32.mrf.mxu0 }
 0x7f8   :  { %v1940_v18 = vadd.f32 %v2343_v55, %v1939_v10 }
 0x7fa   :  { %v1958_v37 = vmax.f32 %v1940_v18, 0.0 }
 0x7fc   :  { %v1970_v44 = vadd.f32 %v1969_v8, %v1958_v37 }
 0x7ff   :  { %v1942_v2 = vpop.f32.mrf.mxu0 }
 0x800   :  { %v1943_v6 = vadd.f32 %v2343_v55, %v1942_v2 }
 0x802   :  { %v1959_v45 = vmax.f32 %v1943_v6, 0.0 }
 0x804   :  { %v1971_v36 = vadd.f32 %v1970_v44, %v1959_v45 }
 0x807   :  { %v1945_v0 = vpop.f32.mrf.mxu0 }
 0x808   :  { %v1946_v24 = vadd.f32 %v2343_v55, %v1945_v0 }
 0x80a   :  { %v1960_v17 = vmax.f32 %v1946_v24, 0.0 }
 0x80c   :  { %v1972_v16 = vsel %vm936_vm2, %v1960_v17, 0.0  ;;  %2296 = vmatpush.msk.msrb.mxu1 %vm936_vm2, %v1960_v17 }
 0x80d   :  { %v1973_v49 = vadd.f32 %v1972_v16, %v1971_v36 }
 0x80e   :  { %2005 = vmatpush.msrb.mxu1 %v1959_v45 }
 0x80f   :  { %v1974_v62 = vrot.slane %v1973_v49, 4 }
 0x810   :  { %2006 = vmatpush.msrb.mxu1 %v1958_v37 }
 0x811   :  { %v1975_v15 = vadd.f32 %v1974_v62, %v1973_v49 }
 0x812   :  { %2007 = vmatpush.msrb.mxu1 %v1957_v50 }
 0x813   :  { %v1976_v14 = vrot.slane %v1975_v15, 2 }
 0x814   :  { %2008 = vmatpush.msrb.mxu1 %v1956_v25 }
 0x815   :  { %v1977_v22 = vadd.f32 %v1976_v14, %v1975_v15 }
 0x816   :  { %2009 = vmatpush.msrb.mxu1 %v1955_v61 }
 0x817   :  { %v1978_v38 = vrot.slane %v1977_v22, 1 }
 0x818   :  { %2010 = vmatpush.msrb.mxu1 %v1954_v60 }
 0x819   :  { %v1979_v26 = vadd.f32 %v1978_v38, %v1977_v22 }
 0x81a   :  { %2011 = vmatpush.msrb.mxu1 %v1953_v54  ;;  %v1985_v54 = vld [vmem:[%s4054_s8 + $0x18] sm:$0x1] }
 0x81b   :  { %v1980_v55 = vmul.f32 %v1979_v26, %v3152_v41  ;;  %v1982_v41 = vld [vmem:[%s4054_s8] sm:$0xff] }
 0x81c   :  { %2012 = vmatpush.msrb.mxu1 %v1952_v7  ;;  %v2033_v7 = vld [vmem:[%s4051_s5 + $0x18] sm:$0xff] }
 0x81d   :  { %v3965_v58 = vadd.f32 %v1980_v55, %v1555_v35 }
 0x81e   :  { %2013 = vmatpush.msrb.mxu1 %v1951_v40  ;;  %v2035_v40 = vld [vmem:[%s4051_s5 + $0x28] sm:$0xff] }
 0x820   :  { %2014 = vmatpush.msrb.mxu1 %v1950_v63  ;;  %v2036_v63 = vld [vmem:[%s4051_s5 + $0x30] sm:$0xff] }
 0x822   :  { %2015 = vmatpush.msrb.mxu1 %v1949_v32  ;;  %v2038_v32 = vld [vmem:[%s4051_s5 + $0x40] sm:$0xff] }
 0x823   :  { %2057 = vmatpush.msrb.mxu2 %v2038_v32 }
 0x824   :  { %2016 = vmatpush.msrb.mxu1 %v1948_v23  ;;  %v2037_v23 = vld [vmem:[%s4051_s5 + $0x38] sm:$0xff]  ;;  %s2380_s5 = smov [#allocation2]  }
 0x825   :  { %2297 = vmatmul.msk.f32.vlgmr.msrb.gmra.mxu1 %vm958_vm5, %v1982_v41  ;;  %2058 = vmatpush.msrb.mxu2 %v2037_v23  ;;  %s2101_s6 = sshll.u32 %s2380_s5, 4  ;;  %s2102_s6 = int_to_ptr.vmem [resolvable:$true] %s2101_s6 }
 0x827   :  { %2059 = vmatpush.msrb.mxu2 %v2036_v63 }
 0x829   :  { %2060 = vmatpush.msrb.mxu2 %v2035_v40 }
 0x82b   :  { %2061 = vmatpush.msrb.mxu2 %v2034_v11 }
 0x82d   :  { %2298 = vmatmul.msk.f32.gmra.mxu1 %vm958_vm5, %v1983_v52  ;;  %2062 = vmatpush.msrb.mxu2 %v2033_v7 }
 0x82f   :  { %2063 = vmatpush.msrb.mxu2 %v2032_v12 }
 0x831   :  { %2064 = vmatpush.msrb.mxu2 %v2031_v48 }
 0x833   :  { %2065 = vmatpush.msrb.mxu2 %v2030_v47 }
 0x835   :  { %2299 = vmatmul.msk.f32.gmra.mxu1 %vm958_vm5, %v1984_v1 }
 0x83d   :  { %2300 = vmatmul.msk.f32.gmra.mxu1 %vm958_vm5, %v1985_v54 }
 0x8a2   :  { %v2018_v60 = vpop.f32.mrf.mxu1 }
 0x8a3   :  { %2066 = vmatmul.f32.vlgmr.msrb.gmra.mxu2 %v2018_v60 }
 0x8aa   :  { %v2021_v20 = vpop.f32.mrf.mxu1 }
 0x8ab   :  { %2069 = vmatmul.f32.gmra.mxu2 %v2021_v20 }
 0x8b2   :  { %v2024_v9 = vpop.f32.mrf.mxu1 }
 0x8b3   :  { %2072 = vmatmul.f32.gmra.mxu2 %v2024_v9 }
 0x8ba   :  { %v2027_v3 = vpop.f32.mrf.mxu1 }
 0x8bb   :  { %2075 = vmatmul.f32.gmra.mxu2 %v2027_v3 }
 0x926   :  { %v2067_v33 = vpop.f32.mrf.mxu2 }
 0x927   :  { %v2068_v25 = vadd.f32 %v2344_v30, %v2067_v33 }
 0x929   :  { %v2079_v56 = vmax.f32 %v2068_v25, 0.0 }
 0x92e   :  { %v2070_v61 = vpop.f32.mrf.mxu2 }
 0x92f   :  { %v2071_v53 = vadd.f32 %v2344_v30, %v2070_v61 }
 0x931   :  { %v2080_v29 = vmax.f32 %v2071_v53, 0.0 }
 0x933   :  { %v2083_v18 = vadd.f32 %v2080_v29, %v2079_v56 }
 0x936   :  { %v2073_v19 = vpop.f32.mrf.mxu2 }
 0x937   :  { %v2074_v57 = vadd.f32 %v2344_v30, %v2073_v19 }
 0x939   :  { %v2081_v50 = vmax.f32 %v2074_v57, 0.0 }
 0x93b   :  { %v2084_v44 = vadd.f32 %v2083_v18, %v2081_v50 }
 0x93e   :  { %v2076_v8 = vpop.f32.mrf.mxu2 }
 0x93f   :  { %v2077_v10 = vadd.f32 %v2344_v30, %v2076_v8 }
 0x941   :  { %v2082_v37 = vmax.f32 %v2077_v10, 0.0 }
 0x943   :  { %v2085_v2 = vsel %vm1058_vm6, %v2082_v37, 0.0 }
 0x944   :  { %v2086_v6 = vadd.f32 %v2085_v2, %v2084_v44 }
 0x946   :  { %v2087_v45 = vrot.slane %v2086_v6, 4 }
 0x948   :  { %v2088_v13 = vadd.f32 %v2087_v45, %v2086_v6 }
 0x94a   :  { %v2089_v36 = vrot.slane %v2088_v13, 2 }
 0x94c   :  { %v2090_v46 = vadd.f32 %v2089_v36, %v2088_v13 }
 0x94e   :  { %v2091_v0 = vrot.slane %v2090_v46, 1 }
 0x950   :  { %v2092_v24 = vadd.f32 %v2091_v0, %v2090_v46 }
 0x952   :  { %v2093_v17 = vmul.f32 %v2092_v24, %v3313_v59 }
 0x954   :  { %v2094_v27 = vadd.f32 %v2093_v17, %v3965_v58 }
 0x956   :  { %2096 = vst [vmem:[#allocation2 + $0x1] sm:$0x1] %v2094_v27 }
 0x957   :  { %2109 = dma.vmem_to_hbm [thread:$0]  %s2102_s6, 32, %s2104_s10, [#allocation3], %s2381_s0, %s2381_s0, %s2382_s11  }
 0x958   :  { %2375 = dma.done.wait [#allocation3], 32  }
 0x959   :  { %2376 = vsyncadd [#allocation3], 4294967264 }
 0x95a   :  { %2114 = vsyncpa [#allocation3], 1 }

</bundles_post_ra>
